<compile_context>
chip_gen: v7x
topology: tpu7x:2x2x1
jax: 0.10.0
libtpu: 0.0.40
codegen_flags: <defaults>
</compile_context>

<pallas_src>
import jax
import jax.numpy as jnp
from jax import lax
from jax.experimental import pallas as pl
from jax.experimental.pallas import tpu as pltpu

# Compat shim for the compiler-params class name across jax versions.
_CompilerParams = getattr(pltpu, "CompilerParams", None) or getattr(
    pltpu, "TPUCompilerParams")


# ----------------------------------------------------------------- conv core --
def _shift_cols(xb, use_roll):
    """Column-shifted copies of xb (R, W, C):
    left[:, w, :]  = xb[:, w-1, :]  (zero at w == 0)
    right[:, w, :] = xb[:, w+1, :]  (zero at w == W-1)
    """
    R, W, C = xb.shape
    if use_roll:
        # XLU sublane rotation + single-column boundary mask (VPU select).
        col = lax.broadcasted_iota(jnp.int32, (1, W, 1), 1)
        zero = jnp.zeros((), xb.dtype)
        left = jnp.where(col == 0, zero, pltpu.roll(xb, shift=1, axis=1))
        right = jnp.where(col == W - 1, zero, pltpu.roll(xb, shift=W - 1, axis=1))
    else:
        # Fallback path (plain slices + concat) if the roll fails to lower.
        zcol = jnp.zeros((R, 1, C), xb.dtype)
        left = jnp.concatenate([zcol, xb[:, :W - 1, :]], axis=1)
        right = jnp.concatenate([xb[:, 1:, :], zcol], axis=1)
    return left, right


def _conv3x3(xwin, w_ref, n_out, use_roll):
    """'Same' 3x3 convolution over (n_out + 2) input rows.

    xwin:  (n_out + 2, W, C) value; rows include a 1-row halo on each side and
           the caller guarantees out-of-image halo rows are already zero.
           Column zero-padding is handled here (shift + boundary mask).
    w_ref: (3, 3*C, Cout) bf16 ref with w[kh, kw*C + c, o] = torch_w[o, c, kh, kw].
    returns (n_out, W, Cout) f32.
    """
    R, W, C = xwin.shape
    xb = xwin.astype(w_ref.dtype)                      # build xcat in bf16
    left, right = _shift_cols(xb, use_roll)
    xcat = jnp.concatenate([left, xb, right], axis=-1)  # (R, W, 3C) bf16
    # TODO(synk): on v6e, when 3*C < 256 the kh taps could also be folded into
    # the contraction (single K=9*C matmul) to fill the 256-deep MXU.
    acc = None
    for kh in range(3):
        lhs = xcat[kh:kh + n_out].reshape(n_out * W, 3 * C)   # leading-axis slice
        d = jnp.dot(lhs, w_ref[kh], preferred_element_type=jnp.float32)
        acc = d if acc is None else acc + d
    return acc.reshape(n_out, W, -1)                   # (n_out, W, Cout) f32


# -------------------------------------------------------------------- kernel --
def _make_kernel(*, TH, H, W, has_proj, use_roll):
    def kernel(x_ref, w1_ref, s1_ref, b1_ref, w2_ref, s2_ref, b2_ref, *rest):
        if has_proj:
            wsc_ref, ssc_ref, bsc_ref, out_ref, xpad_ref = rest
        else:
            out_ref, xpad_ref = rest

        Cin = x_ref.shape[-1]
        Cp = s1_ref.shape[-1]
        t = pl.program_id(1)
        r0 = pl.multiple_of(t * TH, TH)               # first output row of tile

        # --- in-kernel halo: 2-row zero-padded copy of the image in VMEM ------
        # (rebuilt per tile so every grid step is independent -> both grid axes
        #  can be "parallel"; the copy is a cheap VMEM->VMEM pass that replaces
        #  the former wrapper-side HBM pad round trip)
        zrows = jnp.zeros((2, W, Cin), xpad_ref.dtype)
        xpad_ref[pl.ds(0, 2), :, :] = zrows
        xpad_ref[pl.ds(H + 2, 2), :, :] = zrows
        xpad_ref[pl.ds(2, H), :, :] = x_ref[...]

        # padded rows [r0, r0+TH+4) == image rows [r0-2, r0+TH+2)
        xwin = xpad_ref[pl.ds(r0, TH + 4), :, :]      # (TH+4, W, Cin) bf16

        # conv1 -> bn1 -> relu for image rows r0-1 .. r0+TH (conv2's row halo).
        h1 = _conv3x3(xwin, w1_ref, TH + 2, use_roll)  # (TH+2, W, Cp) f32
        h1 = jnp.maximum(h1 * s1_ref[...] + b1_ref[...], 0.0)
        # conv2 zero-pads its input: halo rows outside the image must be zero.
        row = lax.broadcasted_iota(jnp.int32, (TH + 2, 1, 1), 0) + (r0 - 1)
        h1 = jnp.where((row >= 0) & (row < H), h1, 0.0)

        # conv2 -> bn2 (column padding handled inside the helper, no h1p copy).
        h2 = _conv3x3(h1.astype(w2_ref.dtype), w2_ref, TH, use_roll)  # (TH,W,Cp)
        h2 = h2 * s2_ref[...] + b2_ref[...]

        # shortcut
        x_in = x_ref[pl.ds(r0, TH), :, :]             # (TH, W, Cin) bf16
        if has_proj:
            sc = jnp.dot(x_in.reshape(TH * W, Cin), wsc_ref[...],
                         preferred_element_type=jnp.float32).reshape(TH, W, Cp)
            sc = sc * ssc_ref[...] + bsc_ref[...]
        else:                                         # identity: plain f32 add
            sc = x_in.astype(jnp.float32)

        out_ref[...] = jnp.maximum(h2 + sc, 0.0).astype(out_ref.dtype)

    return kernel


# ------------------------------------------------------------------- wrapper --
def _fold_bn(gamma, beta, mean, var, eps=1e-5):
    s = gamma / jnp.sqrt(var + eps)
    b = beta - mean * s
    return (s.reshape(1, -1).astype(jnp.float32),
            b.reshape(1, -1).astype(jnp.float32))


def _vmem_capacity_bytes():
    try:
        cap = int(getattr(pltpu.get_tpu_info(), "vmem_capacity_bytes", 0))
        if cap > 0:
            return cap
    except Exception:
        pass
    return 64 * 1024 * 1024        # conservative (v7x per-core VMEM)


def _pick_row_tile(H, W, Cin, Cp, vmem_cap):
    """Largest row tile (divisor of H, multiple of 8) whose per-tile
    intermediates fit ~1/8 of this generation's VMEM (leaves room for the
    resident image block, weights and double buffering)."""
    per_row = W * (3 * 2 * Cin * 3 + 3 * 2 * Cp * 3 + 4 * Cp * 3)  # rough bytes
    resident = (H + 4) * W * Cin * 2 + 2 * H * W * Cin * 2
    budget = max(vmem_cap // 8 - resident, 8 * per_row)
    target = max(8, budget // max(per_row, 1))
    if H % 8 != 0 or H <= 8:
        return H
    cands = [d for d in range(8, H + 1, 8) if H % d == 0 and d <= target]
    return max(cands) if cands else 8


def basic_block_pallas(x_nchw, params, *, stride=1, row_tile=None):
    """Pallas implementation of BasicBlock.forward (inference-mode BN)."""
    # TODO(synk): only stride=1 is implemented in-kernel; the stride=2
    # downsampling variant (strided 3x3 / 1x1 conv) is not expressed here.
    assert stride == 1
    N, Cin, H, W = x_nchw.shape
    Cp = params["w1"].shape[0]
    has_proj = "wsc" in params
    if not has_proj:
        assert Cin == Cp, "identity shortcut requires in_planes == planes"

    # NHWC, bf16 activations in HBM; no wrapper-side halo pad (done in-kernel).
    x = jnp.transpose(x_nchw, (0, 2, 3, 1)).astype(jnp.bfloat16)

    # conv weights: torch OIHW -> (kh, kw*Cin, Cout), bf16 for the MXU.
    w1 = jnp.transpose(params["w1"], (2, 3, 1, 0)).reshape(3, 3 * Cin, Cp)
    w2 = jnp.transpose(params["w2"], (2, 3, 1, 0)).reshape(3, 3 * Cp, Cp)
    w1 = w1.astype(jnp.bfloat16)
    w2 = w2.astype(jnp.bfloat16)
    s1, b1 = _fold_bn(**params["bn1"])
    s2, b2 = _fold_bn(**params["bn2"])

    vmem_cap = _vmem_capacity_bytes()
    TH = row_tile if row_tile is not None else _pick_row_tile(H, W, Cin, Cp, vmem_cap)
    assert H % TH == 0, "row_tile must divide H"
    assert TH == H or TH % 8 == 0, "row_tile must be a multiple of 8 (or H)"
    vmem_limit = int(min((3 * vmem_cap) // 4, 128 * 1024 * 1024))

    def _whole(a):
        nd = a.ndim
        return pl.BlockSpec(a.shape, lambda n, t, _nd=nd: (0,) * _nd)

    operands = [x, w1, s1, b1, w2, s2, b2]
    # TODO(synk): constant operands (weights / BN vectors) could be single
    # buffered (pipeline_mode=pl.Buffered(1)) to free VMEM headroom on v7x.
    in_specs = [
        # full image of batch element n, VMEM-resident across the row-tile axis
        pl.BlockSpec((None, H, W, Cin), lambda n, t: (n, 0, 0, 0)),
        _whole(w1), _whole(s1), _whole(b1),
        _whole(w2), _whole(s2), _whole(b2),
    ]
    if has_proj:
        wsc = jnp.transpose(params["wsc"][:, :, 0, 0], (1, 0)).astype(jnp.bfloat16)
        ssc, bsc = _fold_bn(**params["bnsc"])
        operands += [wsc, ssc, bsc]
        in_specs += [_whole(wsc), _whole(ssc), _whole(bsc)]

    def _call(use_roll):
        kernel = _make_kernel(TH=TH, H=H, W=W, has_proj=has_proj,
                              use_roll=use_roll)
        out = pl.pallas_call(
            kernel,
            out_shape=jax.ShapeDtypeStruct((N, H, W, Cp), jnp.bfloat16),
            grid_spec=pltpu.PrefetchScalarGridSpec(
                num_scalar_prefetch=0,
                grid=(N, H // TH),
                in_specs=in_specs,
                # TODO(synk): for Cp < 128 these stores are lane-masked; a
                # lane-dense (TH, W*Cp) slab would need an in-kernel
                # lane-changing reshape.
                out_specs=pl.BlockSpec((None, TH, W, Cp),
                                       lambda n, t: (n, t, 0, 0)),
                scratch_shapes=[pltpu.VMEM((H + 4, W, Cin), jnp.bfloat16)],
            ),
            compiler_params=_CompilerParams(
                dimension_semantics=("parallel", "parallel"),
                vmem_limit_bytes=vmem_limit,
            ),
        )(*operands)
        return jax.block_until_ready(out)

    try:
        out = _call(True)
    except Exception:
        # Fallback: identical math with slice+concat column shifts in case the
        # XLU roll does not lower for this dtype/layout on the local toolchain.
        out = _call(False)

    return jnp.transpose(out, (0, 3, 1, 2)).astype(x_nchw.dtype)   # NCHW


# ---------------------------------------------------------------- reference --
def basic_block_reference(x, params, *, stride=1):
    def conv(x, w, s, pad):
        return jax.lax.conv_general_dilated(
            x, w, (s, s), [(pad, pad), (pad, pad)],
            dimension_numbers=("NCHW", "OIHW", "NCHW"))

    def bn(x, gamma, beta, mean, var, eps=1e-5):
        sc = gamma / jnp.sqrt(var + eps)
        return x * sc[None, :, None, None] + (beta - mean * sc)[None, :, None, None]

    out = jax.nn.relu(bn(conv(x, params["w1"], stride, 1), **params["bn1"]))
    out = bn(conv(out, params["w2"], 1, 1), **params["bn2"])
    if "wsc" in params:
        short = bn(conv(x, params["wsc"], stride, 0), **params["bnsc"])
    else:
        short = x
    return jax.nn.relu(out + short)


# -------------------------------------------------------------------- params --
def init_params(key, in_planes, planes, stride=1):
    keys = jax.random.split(key, 6)

    def bn_params(k):
        k1, k2, k3, k4 = jax.random.split(k, 4)
        return dict(
            gamma=1.0 + 0.1 * jax.random.normal(k1, (planes,), jnp.float32),
            beta=0.1 * jax.random.normal(k2, (planes,), jnp.float32),
            mean=0.1 * jax.random.normal(k3, (planes,), jnp.float32),
            var=jax.random.uniform(k4, (planes,), jnp.float32, 0.5, 1.5),
        )

    p = {
        "w1": 0.1 * jax.random.normal(keys[0], (planes, in_planes, 3, 3), jnp.float32),
        "bn1": bn_params(keys[1]),
        "w2": 0.1 * jax.random.normal(keys[2], (planes, planes, 3, 3), jnp.float32),
        "bn2": bn_params(keys[3]),
    }
    if stride != 1 or in_planes != planes:
        p["wsc"] = 0.1 * jax.random.normal(keys[4], (planes, in_planes, 1, 1), jnp.float32)
        p["bnsc"] = bn_params(keys[5])
    return p


if __name__ == "__main__":
    key = jax.random.PRNGKey(0)
    k_x1, k_p1, k_x2, k_p2 = jax.random.split(key, 4)

    # case 1: projection shortcut (in_planes != planes), 2 row tiles -> grid (2, 2)
    x1 = jax.random.normal(k_x1, (2, 4, 16, 16), jnp.float32)
    p1 = init_params(k_p1, 4, 8)
    y1 = jax.block_until_ready(basic_block_pallas(x1, p1, row_tile=8))
    r1 = basic_block_reference(x1, p1)
    assert y1.shape == (2, 8, 16, 16)
    assert bool(jnp.allclose(y1, r1, atol=3e-2, rtol=3e-2)), (
        "projection case mismatch: max |diff| = %f"
        % float(jnp.max(jnp.abs(y1 - r1))))

    # case 2: identity shortcut (in_planes == planes), auto row tile (TH = H)
    x2 = jax.random.normal(k_x2, (2, 8, 16, 16), jnp.float32)
    p2 = init_params(k_p2, 8, 8)
    y2 = jax.block_until_ready(basic_block_pallas(x2, p2))
    r2 = basic_block_reference(x2, p2)
    assert y2.shape == (2, 8, 16, 16)
    assert bool(jnp.allclose(y2, r2, atol=3e-2, rtol=3e-2)), (
        "identity case mismatch: max |diff| = %f"
        % float(jnp.max(jnp.abs(y2 - r2))))

    print("KERNEL_OK")
</pallas_src>

<mosaic_0001>
module attributes {stable_mosaic.version = 11 : i64} {
  func.func @kernel(%arg0: i32, %arg1: i32, %arg2: memref<1x16x16x4xbf16, #tpu.memory_space<vmem>>, %arg3: memref<3x12x8xbf16, #tpu.memory_space<vmem>>, %arg4: memref<1x8xf32, #tpu.memory_space<vmem>>, %arg5: memref<1x8xf32, #tpu.memory_space<vmem>>, %arg6: memref<3x24x8xbf16, #tpu.memory_space<vmem>>, %arg7: memref<1x8xf32, #tpu.memory_space<vmem>>, %arg8: memref<1x8xf32, #tpu.memory_space<vmem>>, %arg9: memref<4x8xbf16, #tpu.memory_space<vmem>>, %arg10: memref<1x8xf32, #tpu.memory_space<vmem>>, %arg11: memref<1x8xf32, #tpu.memory_space<vmem>>, %arg12: memref<1x8x16x8xbf16, #tpu.memory_space<vmem>>, %arg13: memref<20x16x4xbf16, #tpu.memory_space<vmem>>) attributes {dimension_semantics = [#tpu.dimension_semantics<parallel>, #tpu.dimension_semantics<parallel>], iteration_bounds = array<i64: 2, 2>, scalar_prefetch = 0 : i64, scratch_operands = 1 : i64, tpu.core_type = #tpu.core_type<tc>, window_params = [{transform_indices = @transform_0, window_bounds = array<i64: 1, 16, 16, 4>}, {pipeline_mode = #tpu.pipeline_mode<synchronous>, transform_indices = @transform_1, window_bounds = array<i64: 3, 12, 8>}, {pipeline_mode = #tpu.pipeline_mode<synchronous>, transform_indices = @transform_2, window_bounds = array<i64: 1, 8>}, {pipeline_mode = #tpu.pipeline_mode<synchronous>, transform_indices = @transform_3, window_bounds = array<i64: 1, 8>}, {pipeline_mode = #tpu.pipeline_mode<synchronous>, transform_indices = @transform_4, window_bounds = array<i64: 3, 24, 8>}, {pipeline_mode = #tpu.pipeline_mode<synchronous>, transform_indices = @transform_5, window_bounds = array<i64: 1, 8>}, {pipeline_mode = #tpu.pipeline_mode<synchronous>, transform_indices = @transform_6, window_bounds = array<i64: 1, 8>}, {pipeline_mode = #tpu.pipeline_mode<synchronous>, transform_indices = @transform_7, window_bounds = array<i64: 4, 8>}, {pipeline_mode = #tpu.pipeline_mode<synchronous>, transform_indices = @transform_8, window_bounds = array<i64: 1, 8>}, {pipeline_mode = #tpu.pipeline_mode<synchronous>, transform_indices = @transform_9, window_bounds = array<i64: 1, 8>}, {transform_indices = @transform_10, window_bounds = array<i64: 1, 8, 16, 8>}]} {
    %c8_i32 = arith.constant 8 : i32
    %0 = arith.muli %arg1, %c8_i32 : i32
    %1 = tpu.assume_multiple %0, 8 : i32
    %cst = arith.constant 0.000000e+00 : bf16
    %2 = vector.broadcast %cst : bf16 to vector<2x16x4xbf16>
    %c0 = arith.constant 0 : index
    %c0_0 = arith.constant 0 : index
    %c0_1 = arith.constant 0 : index
    %3 = vector.load %arg13[%c0, %c0_0, %c0_1] : memref<20x16x4xbf16, #tpu.memory_space<vmem>>, vector<2x16x4xbf16>
    tpu.vector_store %arg13[%c0, %c0_0, %c0_1], %2 {strides = array<i32>} : memref<20x16x4xbf16, #tpu.memory_space<vmem>>, vector<2x16x4xbf16>,
    %c18 = arith.constant 18 : index
    %c0_2 = arith.constant 0 : index
    %c0_3 = arith.constant 0 : index
    %4 = vector.load %arg13[%c18, %c0_2, %c0_3] : memref<20x16x4xbf16, #tpu.memory_space<vmem>>, vector<2x16x4xbf16>
    tpu.vector_store %arg13[%c18, %c0_2, %c0_3], %2 {strides = array<i32>} : memref<20x16x4xbf16, #tpu.memory_space<vmem>>, vector<2x16x4xbf16>,
    %c0_4 = arith.constant 0 : index
    %c0_5 = arith.constant 0 : index
    %c0_6 = arith.constant 0 : index
    %c0_7 = arith.constant 0 : index
    %5 = vector.load %arg2[%c0_4, %c0_5, %c0_6, %c0_7] : memref<1x16x16x4xbf16, #tpu.memory_space<vmem>>, vector<1x16x16x4xbf16>
    %6 = vector.shape_cast %5 : vector<1x16x16x4xbf16> to vector<16x16x4xbf16>
    %c2 = arith.constant 2 : index
    %c0_8 = arith.constant 0 : index
    %c0_9 = arith.constant 0 : index
    %7 = vector.load %arg13[%c2, %c0_8, %c0_9] : memref<20x16x4xbf16, #tpu.memory_space<vmem>>, vector<16x16x4xbf16>
    tpu.vector_store %arg13[%c2, %c0_8, %c0_9], %6 {strides = array<i32>} : memref<20x16x4xbf16, #tpu.memory_space<vmem>>, vector<16x16x4xbf16>,
    %8 = arith.index_cast %1 : i32 to index
    %c0_10 = arith.constant 0 : index
    %c0_11 = arith.constant 0 : index
    %9 = vector.load %arg13[%8, %c0_10, %c0_11] : memref<20x16x4xbf16, #tpu.memory_space<vmem>>, vector<12x16x4xbf16>
    %10 = tpu.iota {dimensions = array<i32: 1>} : vector<1x16x1xi32>
    %c0_i32 = arith.constant 0 : i32
    %11 = vector.broadcast %c0_i32 : i32 to vector<1x16x1xi32>
    %12 = arith.cmpi eq, %10, %11 : vector<1x16x1xi32>
    %c1_i32 = arith.constant 1 : i32
    %13 = tpu.dynamic_rotate %9 by %c1_i32 dim 1 : vector<12x16x4xbf16>, i32 -> vector<12x16x4xbf16>
    %cst_12 = arith.constant 0.000000e+00 : bf16
    %14 = vector.shape_cast %12 : vector<1x16x1xi1> to vector<1x16x1xi1>
    %15 = vector.broadcast %14 : vector<1x16x1xi1> to vector<12x16x4xi1>
    %16 = vector.broadcast %cst_12 : bf16 to vector<12x16x4xbf16>
    %17 = arith.select %15, %16, %13 : vector<12x16x4xi1>, vector<12x16x4xbf16>
    %c15_i32 = arith.constant 15 : i32
    %18 = vector.broadcast %c15_i32 : i32 to vector<1x16x1xi32>
    %19 = arith.cmpi eq, %10, %18 : vector<1x16x1xi32>
    %c15_i32_13 = arith.constant 15 : i32
    %20 = tpu.dynamic_rotate %9 by %c15_i32_13 dim 1 : vector<12x16x4xbf16>, i32 -> vector<12x16x4xbf16>
    %cst_14 = arith.constant 0.000000e+00 : bf16
    %21 = vector.shape_cast %19 : vector<1x16x1xi1> to vector<1x16x1xi1>
    %22 = vector.broadcast %21 : vector<1x16x1xi1> to vector<12x16x4xi1>
    %23 = vector.broadcast %cst_14 : bf16 to vector<12x16x4xbf16>
    %24 = arith.select %22, %23, %20 : vector<12x16x4xi1>, vector<12x16x4xbf16>
    %25 = tpu.concatenate %17, %9, %24 in 2 : vector<12x16x4xbf16>, vector<12x16x4xbf16>, vector<12x16x4xbf16> -> vector<12x16x12xbf16>
    %26 = vector.extract_strided_slice %25 {offsets = [0, 0, 0], sizes = [10, 16, 12], strides = [1, 1, 1]} : vector<12x16x12xbf16> to vector<10x16x12xbf16>
    %27 = vector.shape_cast %26 : vector<10x16x12xbf16> to vector<160x12xbf16>
    %c0_15 = arith.constant 0 : index
    %c0_16 = arith.constant 0 : index
    %c0_17 = arith.constant 0 : index
    %28 = vector.load %arg3[%c0_15, %c0_16, %c0_17] : memref<3x12x8xbf16, #tpu.memory_space<vmem>>, vector<1x12x8xbf16>
    %29 = vector.shape_cast %28 : vector<1x12x8xbf16> to vector<12x8xbf16>
    %cst_18 = arith.constant dense<0.000000e+00> : vector<160x8xf32>
    %30 = tpu.matmul %27, %29, %cst_18 {dimension_numbers = #tpu.dot_dimension_numbers<[1], [0], [0], [1], [0, 0, 1, 1], [], []>} : vector<160x12xbf16>, vector<12x8xbf16>, vector<160x8xf32> -> vector<160x8xf32>
    %31 = vector.extract_strided_slice %25 {offsets = [1, 0, 0], sizes = [10, 16, 12], strides = [1, 1, 1]} : vector<12x16x12xbf16> to vector<10x16x12xbf16>
    %32 = vector.shape_cast %31 : vector<10x16x12xbf16> to vector<160x12xbf16>
    %c1 = arith.constant 1 : index
    %c0_19 = arith.constant 0 : index
    %c0_20 = arith.constant 0 : index
    %33 = vector.load %arg3[%c1, %c0_19, %c0_20] : memref<3x12x8xbf16, #tpu.memory_space<vmem>>, vector<1x12x8xbf16>
    %34 = vector.shape_cast %33 : vector<1x12x8xbf16> to vector<12x8xbf16>
    %cst_21 = arith.constant dense<0.000000e+00> : vector<160x8xf32>
    %35 = tpu.matmul %32, %34, %cst_21 {dimension_numbers = #tpu.dot_dimension_numbers<[1], [0], [0], [1], [0, 0, 1, 1], [], []>} : vector<160x12xbf16>, vector<12x8xbf16>, vector<160x8xf32> -> vector<160x8xf32>
    %36 = arith.addf %30, %35 : vector<160x8xf32>
    %37 = vector.extract_strided_slice %25 {offsets = [2, 0, 0], sizes = [10, 16, 12], strides = [1, 1, 1]} : vector<12x16x12xbf16> to vector<10x16x12xbf16>
    %38 = vector.shape_cast %37 : vector<10x16x12xbf16> to vector<160x12xbf16>
    %c2_22 = arith.constant 2 : index
    %c0_23 = arith.constant 0 : index
    %c0_24 = arith.constant 0 : index
    %39 = vector.load %arg3[%c2_22, %c0_23, %c0_24] : memref<3x12x8xbf16, #tpu.memory_space<vmem>>, vector<1x12x8xbf16>
    %40 = vector.shape_cast %39 : vector<1x12x8xbf16> to vector<12x8xbf16>
    %cst_25 = arith.constant dense<0.000000e+00> : vector<160x8xf32>
    %41 = tpu.matmul %38, %40, %cst_25 {dimension_numbers = #tpu.dot_dimension_numbers<[1], [0], [0], [1], [0, 0, 1, 1], [], []>} : vector<160x12xbf16>, vector<12x8xbf16>, vector<160x8xf32> -> vector<160x8xf32>
    %42 = arith.addf %36, %41 : vector<160x8xf32>
    %43 = vector.shape_cast %42 : vector<160x8xf32> to vector<10x16x8xf32>
    %c0_26 = arith.constant 0 : index
    %c0_27 = arith.constant 0 : index
    %44 = vector.load %arg4[%c0_26, %c0_27] : memref<1x8xf32, #tpu.memory_space<vmem>>, vector<1x8xf32>
    %45 = vector.shape_cast %44 : vector<1x8xf32> to vector<1x1x8xf32>
    %46 = vector.broadcast %45 : vector<1x1x8xf32> to vector<10x16x8xf32>
    %47 = arith.mulf %43, %46 : vector<10x16x8xf32>
    %c0_28 = arith.constant 0 : index
    %c0_29 = arith.constant 0 : index
    %48 = vector.load %arg5[%c0_28, %c0_29] : memref<1x8xf32, #tpu.memory_space<vmem>>, vector<1x8xf32>
    %49 = vector.shape_cast %48 : vector<1x8xf32> to vector<1x1x8xf32>
    %50 = vector.broadcast %49 : vector<1x1x8xf32> to vector<10x16x8xf32>
    %51 = arith.addf %47, %50 : vector<10x16x8xf32>
    %cst_30 = arith.constant 0.000000e+00 : f32
    %52 = vector.broadcast %cst_30 : f32 to vector<10x16x8xf32>
    %53 = arith.maximumf %51, %52 : vector<10x16x8xf32>
    %54 = tpu.iota {dimensions = array<i32: 0>} : vector<10x1x1xi32>
    %c1_i32_31 = arith.constant 1 : i32
    %55 = arith.subi %1, %c1_i32_31 : i32
    %56 = vector.broadcast %55 : i32 to vector<10x1x1xi32>
    %57 = arith.addi %54, %56 : vector<10x1x1xi32>
    %c0_i32_32 = arith.constant 0 : i32
    %58 = vector.broadcast %c0_i32_32 : i32 to vector<10x1x1xi32>
    %59 = arith.cmpi sge, %57, %58 : vector<10x1x1xi32>
    %c16_i32 = arith.constant 16 : i32
    %60 = vector.broadcast %c16_i32 : i32 to vector<10x1x1xi32>
    %61 = arith.cmpi slt, %57, %60 : vector<10x1x1xi32>
    %62 = arith.andi %59, %61 : vector<10x1x1xi1>
    %cst_33 = arith.constant 0.000000e+00 : f32
    %63 = vector.shape_cast %62 : vector<10x1x1xi1> to vector<10x1x1xi1>
    %64 = vector.broadcast %63 : vector<10x1x1xi1> to vector<10x16x8xi1>
    %65 = vector.broadcast %cst_33 : f32 to vector<10x16x8xf32>
    %66 = arith.select %64, %53, %65 : vector<10x16x8xi1>, vector<10x16x8xf32>
    %67 = arith.truncf %66 : vector<10x16x8xf32> to vector<10x16x8xbf16>
    %68 = tpu.iota {dimensions = array<i32: 1>} : vector<1x16x1xi32>
    %c0_i32_34 = arith.constant 0 : i32
    %69 = vector.broadcast %c0_i32_34 : i32 to vector<1x16x1xi32>
    %70 = arith.cmpi eq, %68, %69 : vector<1x16x1xi32>
    %c1_i32_35 = arith.constant 1 : i32
    %71 = tpu.dynamic_rotate %67 by %c1_i32_35 dim 1 : vector<10x16x8xbf16>, i32 -> vector<10x16x8xbf16>
    %cst_36 = arith.constant 0.000000e+00 : bf16
    %72 = vector.shape_cast %70 : vector<1x16x1xi1> to vector<1x16x1xi1>
    %73 = vector.broadcast %72 : vector<1x16x1xi1> to vector<10x16x8xi1>
    %74 = vector.broadcast %cst_36 : bf16 to vector<10x16x8xbf16>
    %75 = arith.select %73, %74, %71 : vector<10x16x8xi1>, vector<10x16x8xbf16>
    %c15_i32_37 = arith.constant 15 : i32
    %76 = vector.broadcast %c15_i32_37 : i32 to vector<1x16x1xi32>
    %77 = arith.cmpi eq, %68, %76 : vector<1x16x1xi32>
    %c15_i32_38 = arith.constant 15 : i32
    %78 = tpu.dynamic_rotate %67 by %c15_i32_38 dim 1 : vector<10x16x8xbf16>, i32 -> vector<10x16x8xbf16>
    %cst_39 = arith.constant 0.000000e+00 : bf16
    %79 = vector.shape_cast %77 : vector<1x16x1xi1> to vector<1x16x1xi1>
    %80 = vector.broadcast %79 : vector<1x16x1xi1> to vector<10x16x8xi1>
    %81 = vector.broadcast %cst_39 : bf16 to vector<10x16x8xbf16>
    %82 = arith.select %80, %81, %78 : vector<10x16x8xi1>, vector<10x16x8xbf16>
    %83 = tpu.concatenate %75, %67, %82 in 2 : vector<10x16x8xbf16>, vector<10x16x8xbf16>, vector<10x16x8xbf16> -> vector<10x16x24xbf16>
    %84 = vector.extract_strided_slice %83 {offsets = [0, 0, 0], sizes = [8, 16, 24], strides = [1, 1, 1]} : vector<10x16x24xbf16> to vector<8x16x24xbf16>
    %85 = vector.shape_cast %84 : vector<8x16x24xbf16> to vector<128x24xbf16>
    %c0_40 = arith.constant 0 : index
    %c0_41 = arith.constant 0 : index
    %c0_42 = arith.constant 0 : index
    %86 = vector.load %arg6[%c0_40, %c0_41, %c0_42] : memref<3x24x8xbf16, #tpu.memory_space<vmem>>, vector<1x24x8xbf16>
    %87 = vector.shape_cast %86 : vector<1x24x8xbf16> to vector<24x8xbf16>
    %cst_43 = arith.constant dense<0.000000e+00> : vector<128x8xf32>
    %88 = tpu.matmul %85, %87, %cst_43 {dimension_numbers = #tpu.dot_dimension_numbers<[1], [0], [0], [1], [0, 0, 1, 1], [], []>} : vector<128x24xbf16>, vector<24x8xbf16>, vector<128x8xf32> -> vector<128x8xf32>
    %89 = vector.extract_strided_slice %83 {offsets = [1, 0, 0], sizes = [8, 16, 24], strides = [1, 1, 1]} : vector<10x16x24xbf16> to vector<8x16x24xbf16>
    %90 = vector.shape_cast %89 : vector<8x16x24xbf16> to vector<128x24xbf16>
    %c1_44 = arith.constant 1 : index
    %c0_45 = arith.constant 0 : index
    %c0_46 = arith.constant 0 : index
    %91 = vector.load %arg6[%c1_44, %c0_45, %c0_46] : memref<3x24x8xbf16, #tpu.memory_space<vmem>>, vector<1x24x8xbf16>
    %92 = vector.shape_cast %91 : vector<1x24x8xbf16> to vector<24x8xbf16>
    %cst_47 = arith.constant dense<0.000000e+00> : vector<128x8xf32>
    %93 = tpu.matmul %90, %92, %cst_47 {dimension_numbers = #tpu.dot_dimension_numbers<[1], [0], [0], [1], [0, 0, 1, 1], [], []>} : vector<128x24xbf16>, vector<24x8xbf16>, vector<128x8xf32> -> vector<128x8xf32>
    %94 = arith.addf %88, %93 : vector<128x8xf32>
    %95 = vector.extract_strided_slice %83 {offsets = [2, 0, 0], sizes = [8, 16, 24], strides = [1, 1, 1]} : vector<10x16x24xbf16> to vector<8x16x24xbf16>
    %96 = vector.shape_cast %95 : vector<8x16x24xbf16> to vector<128x24xbf16>
    %c2_48 = arith.constant 2 : index
    %c0_49 = arith.constant 0 : index
    %c0_50 = arith.constant 0 : index
    %97 = vector.load %arg6[%c2_48, %c0_49, %c0_50] : memref<3x24x8xbf16, #tpu.memory_space<vmem>>, vector<1x24x8xbf16>
    %98 = vector.shape_cast %97 : vector<1x24x8xbf16> to vector<24x8xbf16>
    %cst_51 = arith.constant dense<0.000000e+00> : vector<128x8xf32>
    %99 = tpu.matmul %96, %98, %cst_51 {dimension_numbers = #tpu.dot_dimension_numbers<[1], [0], [0], [1], [0, 0, 1, 1], [], []>} : vector<128x24xbf16>, vector<24x8xbf16>, vector<128x8xf32> -> vector<128x8xf32>
    %100 = arith.addf %94, %99 : vector<128x8xf32>
    %101 = vector.shape_cast %100 : vector<128x8xf32> to vector<8x16x8xf32>
    %c0_52 = arith.constant 0 : index
    %c0_53 = arith.constant 0 : index
    %102 = vector.load %arg7[%c0_52, %c0_53] : memref<1x8xf32, #tpu.memory_space<vmem>>, vector<1x8xf32>
    %103 = vector.shape_cast %102 : vector<1x8xf32> to vector<1x1x8xf32>
    %104 = vector.broadcast %103 : vector<1x1x8xf32> to vector<8x16x8xf32>
    %105 = arith.mulf %101, %104 : vector<8x16x8xf32>
    %c0_54 = arith.constant 0 : index
    %c0_55 = arith.constant 0 : index
    %106 = vector.load %arg8[%c0_54, %c0_55] : memref<1x8xf32, #tpu.memory_space<vmem>>, vector<1x8xf32>
    %107 = vector.shape_cast %106 : vector<1x8xf32> to vector<1x1x8xf32>
    %108 = vector.broadcast %107 : vector<1x1x8xf32> to vector<8x16x8xf32>
    %109 = arith.addf %105, %108 : vector<8x16x8xf32>
    %c0_56 = arith.constant 0 : index
    %110 = arith.index_cast %1 : i32 to index
    %c0_57 = arith.constant 0 : index
    %c0_58 = arith.constant 0 : index
    %111 = vector.load %arg2[%c0_56, %110, %c0_57, %c0_58] : memref<1x16x16x4xbf16, #tpu.memory_space<vmem>>, vector<1x8x16x4xbf16>
    %112 = vector.shape_cast %111 : vector<1x8x16x4xbf16> to vector<8x16x4xbf16>
    %113 = vector.shape_cast %112 : vector<8x16x4xbf16> to vector<128x4xbf16>
    %c0_59 = arith.constant 0 : index
    %c0_60 = arith.constant 0 : index
    %114 = vector.load %arg9[%c0_59, %c0_60] : memref<4x8xbf16, #tpu.memory_space<vmem>>, vector<4x8xbf16>
    %cst_61 = arith.constant dense<0.000000e+00> : vector<128x8xf32>
    %115 = tpu.matmul %113, %114, %cst_61 {dimension_numbers = #tpu.dot_dimension_numbers<[1], [0], [0], [1], [0, 0, 1, 1], [], []>} : vector<128x4xbf16>, vector<4x8xbf16>, vector<128x8xf32> -> vector<128x8xf32>
    %116 = vector.shape_cast %115 : vector<128x8xf32> to vector<8x16x8xf32>
    %c0_62 = arith.constant 0 : index
    %c0_63 = arith.constant 0 : index
    %117 = vector.load %arg10[%c0_62, %c0_63] : memref<1x8xf32, #tpu.memory_space<vmem>>, vector<1x8xf32>
    %118 = vector.shape_cast %117 : vector<1x8xf32> to vector<1x1x8xf32>
    %119 = vector.broadcast %118 : vector<1x1x8xf32> to vector<8x16x8xf32>
    %120 = arith.mulf %116, %119 : vector<8x16x8xf32>
    %c0_64 = arith.constant 0 : index
    %c0_65 = arith.constant 0 : index
    %121 = vector.load %arg11[%c0_64, %c0_65] : memref<1x8xf32, #tpu.memory_space<vmem>>, vector<1x8xf32>
    %122 = vector.shape_cast %121 : vector<1x8xf32> to vector<1x1x8xf32>
    %123 = vector.broadcast %122 : vector<1x1x8xf32> to vector<8x16x8xf32>
    %124 = arith.addf %120, %123 : vector<8x16x8xf32>
    %125 = arith.addf %109, %124 : vector<8x16x8xf32>
    %cst_66 = arith.constant 0.000000e+00 : f32
    %126 = vector.broadcast %cst_66 : f32 to vector<8x16x8xf32>
    %127 = arith.maximumf %125, %126 : vector<8x16x8xf32>
    %128 = arith.truncf %127 : vector<8x16x8xf32> to vector<8x16x8xbf16>
    %c0_67 = arith.constant 0 : index
    %c0_68 = arith.constant 0 : index
    %c0_69 = arith.constant 0 : index
    %c0_70 = arith.constant 0 : index
    %129 = vector.load %arg12[%c0_67, %c0_68, %c0_69, %c0_70] : memref<1x8x16x8xbf16, #tpu.memory_space<vmem>>, vector<1x8x16x8xbf16>
    %130 = vector.shape_cast %129 : vector<1x8x16x8xbf16> to vector<8x16x8xbf16>
    %131 = vector.shape_cast %128 : vector<8x16x8xbf16> to vector<1x8x16x8xbf16>
    tpu.vector_store %arg12[%c0_67, %c0_68, %c0_69, %c0_70], %131 {strides = array<i32>} : memref<1x8x16x8xbf16, #tpu.memory_space<vmem>>, vector<1x8x16x8xbf16>,
    return
  }
  func.func @transform_0(%arg0: i32, %arg1: i32) -> (i32, i32, i32, i32) {
    %c0_i32 = arith.constant 0 : i32
    %c0_i32_0 = arith.constant 0 : i32
    %c0_i32_1 = arith.constant 0 : i32
    %c0_i32_2 = arith.constant 0 : i32
    return %arg0, %c0_i32, %c0_i32_0, %c0_i32_1 : i32, i32, i32, i32
  }
  func.func @transform_1(%arg0: i32, %arg1: i32) -> (i32, i32, i32) {
    %c0_i32 = arith.constant 0 : i32
    %c0_i32_0 = arith.constant 0 : i32
    %c0_i32_1 = arith.constant 0 : i32
    %c0_i32_2 = arith.constant 0 : i32
    return %c0_i32, %c0_i32_0, %c0_i32_1 : i32, i32, i32
  }
  func.func @transform_2(%arg0: i32, %arg1: i32) -> (i32, i32) {
    %c0_i32 = arith.constant 0 : i32
    %c0_i32_0 = arith.constant 0 : i32
    %c0_i32_1 = arith.constant 0 : i32
    return %c0_i32, %c0_i32_0 : i32, i32
  }
  func.func @transform_3(%arg0: i32, %arg1: i32) -> (i32, i32) {
    %c0_i32 = arith.constant 0 : i32
    %c0_i32_0 = arith.constant 0 : i32
    %c0_i32_1 = arith.constant 0 : i32
    return %c0_i32, %c0_i32_0 : i32, i32
  }
  func.func @transform_4(%arg0: i32, %arg1: i32) -> (i32, i32, i32) {
    %c0_i32 = arith.constant 0 : i32
    %c0_i32_0 = arith.constant 0 : i32
    %c0_i32_1 = arith.constant 0 : i32
    %c0_i32_2 = arith.constant 0 : i32
    return %c0_i32, %c0_i32_0, %c0_i32_1 : i32, i32, i32
  }
  func.func @transform_5(%arg0: i32, %arg1: i32) -> (i32, i32) {
    %c0_i32 = arith.constant 0 : i32
    %c0_i32_0 = arith.constant 0 : i32
    %c0_i32_1 = arith.constant 0 : i32
    return %c0_i32, %c0_i32_0 : i32, i32
  }
  func.func @transform_6(%arg0: i32, %arg1: i32) -> (i32, i32) {
    %c0_i32 = arith.constant 0 : i32
    %c0_i32_0 = arith.constant 0 : i32
    %c0_i32_1 = arith.constant 0 : i32
    return %c0_i32, %c0_i32_0 : i32, i32
  }
  func.func @transform_7(%arg0: i32, %arg1: i32) -> (i32, i32) {
    %c0_i32 = arith.constant 0 : i32
    %c0_i32_0 = arith.constant 0 : i32
    %c0_i32_1 = arith.constant 0 : i32
    return %c0_i32, %c0_i32_0 : i32, i32
  }
  func.func @transform_8(%arg0: i32, %arg1: i32) -> (i32, i32) {
    %c0_i32 = arith.constant 0 : i32
    %c0_i32_0 = arith.constant 0 : i32
    %c0_i32_1 = arith.constant 0 : i32
    return %c0_i32, %c0_i32_0 : i32, i32
  }
  func.func @transform_9(%arg0: i32, %arg1: i32) -> (i32, i32) {
    %c0_i32 = arith.constant 0 : i32
    %c0_i32_0 = arith.constant 0 : i32
    %c0_i32_1 = arith.constant 0 : i32
    return %c0_i32, %c0_i32_0 : i32, i32
  }
  func.func @transform_10(%arg0: i32, %arg1: i32) -> (i32, i32, i32, i32) {
    %c0_i32 = arith.constant 0 : i32
    %c0_i32_0 = arith.constant 0 : i32
    %c0_i32_1 = arith.constant 0 : i32
    return %arg0, %arg1, %c0_i32, %c0_i32_0 : i32, i32, i32, i32
  }
}

module attributes {stable_mosaic.version = 11 : i64} {
  func.func @kernel(%arg0: i32, %arg1: i32, %arg2: memref<1x16x16x4xbf16, #tpu.memory_space<vmem>>, %arg3: memref<3x12x8xbf16, #tpu.memory_space<vmem>>, %arg4: memref<1x8xf32, #tpu.memory_space<vmem>>, %arg5: memref<1x8xf32, #tpu.memory_space<vmem>>, %arg6: memref<3x24x8xbf16, #tpu.memory_space<vmem>>, %arg7: memref<1x8xf32, #tpu.memory_space<vmem>>, %arg8: memref<1x8xf32, #tpu.memory_space<vmem>>, %arg9: memref<4x8xbf16, #tpu.memory_space<vmem>>, %arg10: memref<1x8xf32, #tpu.memory_space<vmem>>, %arg11: memref<1x8xf32, #tpu.memory_space<vmem>>, %arg12: memref<1x8x16x8xbf16, #tpu.memory_space<vmem>>, %arg13: memref<20x16x4xbf16, #tpu.memory_space<vmem>>) attributes {dimension_semantics = [#tpu.dimension_semantics<parallel>, #tpu.dimension_semantics<parallel>], iteration_bounds = array<i64: 2, 2>, scalar_prefetch = 0 : i64, scratch_operands = 1 : i64, tpu.core_type = #tpu.core_type<tc>, window_params = [{transform_indices = @transform_0, window_bounds = array<i64: 1, 16, 16, 4>}, {pipeline_mode = #tpu.pipeline_mode<synchronous>, transform_indices = @transform_1, window_bounds = array<i64: 3, 12, 8>}, {pipeline_mode = #tpu.pipeline_mode<synchronous>, transform_indices = @transform_2, window_bounds = array<i64: 1, 8>}, {pipeline_mode = #tpu.pipeline_mode<synchronous>, transform_indices = @transform_3, window_bounds = array<i64: 1, 8>}, {pipeline_mode = #tpu.pipeline_mode<synchronous>, transform_indices = @transform_4, window_bounds = array<i64: 3, 24, 8>}, {pipeline_mode = #tpu.pipeline_mode<synchronous>, transform_indices = @transform_5, window_bounds = array<i64: 1, 8>}, {pipeline_mode = #tpu.pipeline_mode<synchronous>, transform_indices = @transform_6, window_bounds = array<i64: 1, 8>}, {pipeline_mode = #tpu.pipeline_mode<synchronous>, transform_indices = @transform_7, window_bounds = array<i64: 4, 8>}, {pipeline_mode = #tpu.pipeline_mode<synchronous>, transform_indices = @transform_8, window_bounds = array<i64: 1, 8>}, {pipeline_mode = #tpu.pipeline_mode<synchronous>, transform_indices = @transform_9, window_bounds = array<i64: 1, 8>}, {transform_indices = @transform_10, window_bounds = array<i64: 1, 8, 16, 8>}]} {
    %c8_i32 = arith.constant 8 : i32
    %0 = arith.muli %arg1, %c8_i32 : i32
    %1 = tpu.assume_multiple %0, 8 : i32
    %cst = arith.constant 0.000000e+00 : bf16
    %2 = vector.broadcast %cst : bf16 to vector<2x16x4xbf16>
    %c0 = arith.constant 0 : index
    %c0_0 = arith.constant 0 : index
    %c0_1 = arith.constant 0 : index
    %3 = vector.load %arg13[%c0, %c0_0, %c0_1] : memref<20x16x4xbf16, #tpu.memory_space<vmem>>, vector<2x16x4xbf16>
    tpu.vector_store %arg13[%c0, %c0_0, %c0_1], %2 {strides = array<i32>} : memref<20x16x4xbf16, #tpu.memory_space<vmem>>, vector<2x16x4xbf16>,
    %c18 = arith.constant 18 : index
    %c0_2 = arith.constant 0 : index
    %c0_3 = arith.constant 0 : index
    %4 = vector.load %arg13[%c18, %c0_2, %c0_3] : memref<20x16x4xbf16, #tpu.memory_space<vmem>>, vector<2x16x4xbf16>
    tpu.vector_store %arg13[%c18, %c0_2, %c0_3], %2 {strides = array<i32>} : memref<20x16x4xbf16, #tpu.memory_space<vmem>>, vector<2x16x4xbf16>,
    %c0_4 = arith.constant 0 : index
    %c0_5 = arith.constant 0 : index
    %c0_6 = arith.constant 0 : index
    %c0_7 = arith.constant 0 : index
    %5 = vector.load %arg2[%c0_4, %c0_5, %c0_6, %c0_7] : memref<1x16x16x4xbf16, #tpu.memory_space<vmem>>, vector<1x16x16x4xbf16>
    %6 = vector.shape_cast %5 : vector<1x16x16x4xbf16> to vector<16x16x4xbf16>
    %c2 = arith.constant 2 : index
    %c0_8 = arith.constant 0 : index
    %c0_9 = arith.constant 0 : index
    %7 = vector.load %arg13[%c2, %c0_8, %c0_9] : memref<20x16x4xbf16, #tpu.memory_space<vmem>>, vector<16x16x4xbf16>
    tpu.vector_store %arg13[%c2, %c0_8, %c0_9], %6 {strides = array<i32>} : memref<20x16x4xbf16, #tpu.memory_space<vmem>>, vector<16x16x4xbf16>,
    %8 = arith.index_cast %1 : i32 to index
    %c0_10 = arith.constant 0 : index
    %c0_11 = arith.constant 0 : index
    %9 = vector.load %arg13[%8, %c0_10, %c0_11] : memref<20x16x4xbf16, #tpu.memory_space<vmem>>, vector<12x16x4xbf16>
    %cst_12 = arith.constant 0.000000e+00 : bf16
    %10 = vector.broadcast %cst_12 : bf16 to vector<12x1x4xbf16>
    %11 = vector.extract_strided_slice %9 {offsets = [0, 0, 0], sizes = [12, 15, 4], strides = [1, 1, 1]} : vector<12x16x4xbf16> to vector<12x15x4xbf16>
    %12 = tpu.concatenate %10, %11 in 1 : vector<12x1x4xbf16>, vector<12x15x4xbf16> -> vector<12x16x4xbf16>
    %13 = vector.extract_strided_slice %9 {offsets = [0, 1, 0], sizes = [12, 15, 4], strides = [1, 1, 1]} : vector<12x16x4xbf16> to vector<12x15x4xbf16>
    %14 = tpu.concatenate %13, %10 in 1 : vector<12x15x4xbf16>, vector<12x1x4xbf16> -> vector<12x16x4xbf16>
    %15 = tpu.concatenate %12, %9, %14 in 2 : vector<12x16x4xbf16>, vector<12x16x4xbf16>, vector<12x16x4xbf16> -> vector<12x16x12xbf16>
    %16 = vector.extract_strided_slice %15 {offsets = [0, 0, 0], sizes = [10, 16, 12], strides = [1, 1, 1]} : vector<12x16x12xbf16> to vector<10x16x12xbf16>
    %17 = vector.shape_cast %16 : vector<10x16x12xbf16> to vector<160x12xbf16>
    %c0_13 = arith.constant 0 : index
    %c0_14 = arith.constant 0 : index
    %c0_15 = arith.constant 0 : index
    %18 = vector.load %arg3[%c0_13, %c0_14, %c0_15] : memref<3x12x8xbf16, #tpu.memory_space<vmem>>, vector<1x12x8xbf16>
    %19 = vector.shape_cast %18 : vector<1x12x8xbf16> to vector<12x8xbf16>
    %cst_16 = arith.constant dense<0.000000e+00> : vector<160x8xf32>
    %20 = tpu.matmul %17, %19, %cst_16 {dimension_numbers = #tpu.dot_dimension_numbers<[1], [0], [0], [1], [0, 0, 1, 1], [], []>} : vector<160x12xbf16>, vector<12x8xbf16>, vector<160x8xf32> -> vector<160x8xf32>
    %21 = vector.extract_strided_slice %15 {offsets = [1, 0, 0], sizes = [10, 16, 12], strides = [1, 1, 1]} : vector<12x16x12xbf16> to vector<10x16x12xbf16>
    %22 = vector.shape_cast %21 : vector<10x16x12xbf16> to vector<160x12xbf16>
    %c1 = arith.constant 1 : index
    %c0_17 = arith.constant 0 : index
    %c0_18 = arith.constant 0 : index
    %23 = vector.load %arg3[%c1, %c0_17, %c0_18] : memref<3x12x8xbf16, #tpu.memory_space<vmem>>, vector<1x12x8xbf16>
    %24 = vector.shape_cast %23 : vector<1x12x8xbf16> to vector<12x8xbf16>
    %cst_19 = arith.constant dense<0.000000e+00> : vector<160x8xf32>
    %25 = tpu.matmul %22, %24, %cst_19 {dimension_numbers = #tpu.dot_dimension_numbers<[1], [0], [0], [1], [0, 0, 1, 1], [], []>} : vector<160x12xbf16>, vector<12x8xbf16>, vector<160x8xf32> -> vector<160x8xf32>
    %26 = arith.addf %20, %25 : vector<160x8xf32>
    %27 = vector.extract_strided_slice %15 {offsets = [2, 0, 0], sizes = [10, 16, 12], strides = [1, 1, 1]} : vector<12x16x12xbf16> to vector<10x16x12xbf16>
    %28 = vector.shape_cast %27 : vector<10x16x12xbf16> to vector<160x12xbf16>
    %c2_20 = arith.constant 2 : index
    %c0_21 = arith.constant 0 : index
    %c0_22 = arith.constant 0 : index
    %29 = vector.load %arg3[%c2_20, %c0_21, %c0_22] : memref<3x12x8xbf16, #tpu.memory_space<vmem>>, vector<1x12x8xbf16>
    %30 = vector.shape_cast %29 : vector<1x12x8xbf16> to vector<12x8xbf16>
    %cst_23 = arith.constant dense<0.000000e+00> : vector<160x8xf32>
    %31 = tpu.matmul %28, %30, %cst_23 {dimension_numbers = #tpu.dot_dimension_numbers<[1], [0], [0], [1], [0, 0, 1, 1], [], []>} : vector<160x12xbf16>, vector<12x8xbf16>, vector<160x8xf32> -> vector<160x8xf32>
    %32 = arith.addf %26, %31 : vector<160x8xf32>
    %33 = vector.shape_cast %32 : vector<160x8xf32> to vector<10x16x8xf32>
    %c0_24 = arith.constant 0 : index
    %c0_25 = arith.constant 0 : index
    %34 = vector.load %arg4[%c0_24, %c0_25] : memref<1x8xf32, #tpu.memory_space<vmem>>, vector<1x8xf32>
    %35 = vector.shape_cast %34 : vector<1x8xf32> to vector<1x1x8xf32>
    %36 = vector.broadcast %35 : vector<1x1x8xf32> to vector<10x16x8xf32>
    %37 = arith.mulf %33, %36 : vector<10x16x8xf32>
    %c0_26 = arith.constant 0 : index
    %c0_27 = arith.constant 0 : index
    %38 = vector.load %arg5[%c0_26, %c0_27] : memref<1x8xf32, #tpu.memory_space<vmem>>, vector<1x8xf32>
    %39 = vector.shape_cast %38 : vector<1x8xf32> to vector<1x1x8xf32>
    %40 = vector.broadcast %39 : vector<1x1x8xf32> to vector<10x16x8xf32>
    %41 = arith.addf %37, %40 : vector<10x16x8xf32>
    %cst_28 = arith.constant 0.000000e+00 : f32
    %42 = vector.broadcast %cst_28 : f32 to vector<10x16x8xf32>
    %43 = arith.maximumf %41, %42 : vector<10x16x8xf32>
    %44 = tpu.iota {dimensions = array<i32: 0>} : vector<10x1x1xi32>
    %c1_i32 = arith.constant 1 : i32
    %45 = arith.subi %1, %c1_i32 : i32
    %46 = vector.broadcast %45 : i32 to vector<10x1x1xi32>
    %47 = arith.addi %44, %46 : vector<10x1x1xi32>
    %c0_i32 = arith.constant 0 : i32
    %48 = vector.broadcast %c0_i32 : i32 to vector<10x1x1xi32>
    %49 = arith.cmpi sge, %47, %48 : vector<10x1x1xi32>
    %c16_i32 = arith.constant 16 : i32
    %50 = vector.broadcast %c16_i32 : i32 to vector<10x1x1xi32>
    %51 = arith.cmpi slt, %47, %50 : vector<10x1x1xi32>
    %52 = arith.andi %49, %51 : vector<10x1x1xi1>
    %cst_29 = arith.constant 0.000000e+00 : f32
    %53 = vector.shape_cast %52 : vector<10x1x1xi1> to vector<10x1x1xi1>
    %54 = vector.broadcast %53 : vector<10x1x1xi1> to vector<10x16x8xi1>
    %55 = vector.broadcast %cst_29 : f32 to vector<10x16x8xf32>
    %56 = arith.select %54, %43, %55 : vector<10x16x8xi1>, vector<10x16x8xf32>
    %57 = arith.truncf %56 : vector<10x16x8xf32> to vector<10x16x8xbf16>
    %cst_30 = arith.constant 0.000000e+00 : bf16
    %58 = vector.broadcast %cst_30 : bf16 to vector<10x1x8xbf16>
    %59 = vector.extract_strided_slice %57 {offsets = [0, 0, 0], sizes = [10, 15, 8], strides = [1, 1, 1]} : vector<10x16x8xbf16> to vector<10x15x8xbf16>
    %60 = tpu.concatenate %58, %59 in 1 : vector<10x1x8xbf16>, vector<10x15x8xbf16> -> vector<10x16x8xbf16>
    %61 = vector.extract_strided_slice %57 {offsets = [0, 1, 0], sizes = [10, 15, 8], strides = [1, 1, 1]} : vector<10x16x8xbf16> to vector<10x15x8xbf16>
    %62 = tpu.concatenate %61, %58 in 1 : vector<10x15x8xbf16>, vector<10x1x8xbf16> -> vector<10x16x8xbf16>
    %63 = tpu.concatenate %60, %57, %62 in 2 : vector<10x16x8xbf16>, vector<10x16x8xbf16>, vector<10x16x8xbf16> -> vector<10x16x24xbf16>
    %64 = vector.extract_strided_slice %63 {offsets = [0, 0, 0], sizes = [8, 16, 24], strides = [1, 1, 1]} : vector<10x16x24xbf16> to vector<8x16x24xbf16>
    %65 = vector.shape_cast %64 : vector<8x16x24xbf16> to vector<128x24xbf16>
    %c0_31 = arith.constant 0 : index
    %c0_32 = arith.constant 0 : index
    %c0_33 = arith.constant 0 : index
    %66 = vector.load %arg6[%c0_31, %c0_32, %c0_33] : memref<3x24x8xbf16, #tpu.memory_space<vmem>>, vector<1x24x8xbf16>
    %67 = vector.shape_cast %66 : vector<1x24x8xbf16> to vector<24x8xbf16>
    %cst_34 = arith.constant dense<0.000000e+00> : vector<128x8xf32>
    %68 = tpu.matmul %65, %67, %cst_34 {dimension_numbers = #tpu.dot_dimension_numbers<[1], [0], [0], [1], [0, 0, 1, 1], [], []>} : vector<128x24xbf16>, vector<24x8xbf16>, vector<128x8xf32> -> vector<128x8xf32>
    %69 = vector.extract_strided_slice %63 {offsets = [1, 0, 0], sizes = [8, 16, 24], strides = [1, 1, 1]} : vector<10x16x24xbf16> to vector<8x16x24xbf16>
    %70 = vector.shape_cast %69 : vector<8x16x24xbf16> to vector<128x24xbf16>
    %c1_35 = arith.constant 1 : index
    %c0_36 = arith.constant 0 : index
    %c0_37 = arith.constant 0 : index
    %71 = vector.load %arg6[%c1_35, %c0_36, %c0_37] : memref<3x24x8xbf16, #tpu.memory_space<vmem>>, vector<1x24x8xbf16>
    %72 = vector.shape_cast %71 : vector<1x24x8xbf16> to vector<24x8xbf16>
    %cst_38 = arith.constant dense<0.000000e+00> : vector<128x8xf32>
    %73 = tpu.matmul %70, %72, %cst_38 {dimension_numbers = #tpu.dot_dimension_numbers<[1], [0], [0], [1], [0, 0, 1, 1], [], []>} : vector<128x24xbf16>, vector<24x8xbf16>, vector<128x8xf32> -> vector<128x8xf32>
    %74 = arith.addf %68, %73 : vector<128x8xf32>
    %75 = vector.extract_strided_slice %63 {offsets = [2, 0, 0], sizes = [8, 16, 24], strides = [1, 1, 1]} : vector<10x16x24xbf16> to vector<8x16x24xbf16>
    %76 = vector.shape_cast %75 : vector<8x16x24xbf16> to vector<128x24xbf16>
    %c2_39 = arith.constant 2 : index
    %c0_40 = arith.constant 0 : index
    %c0_41 = arith.constant 0 : index
    %77 = vector.load %arg6[%c2_39, %c0_40, %c0_41] : memref<3x24x8xbf16, #tpu.memory_space<vmem>>, vector<1x24x8xbf16>
    %78 = vector.shape_cast %77 : vector<1x24x8xbf16> to vector<24x8xbf16>
    %cst_42 = arith.constant dense<0.000000e+00> : vector<128x8xf32>
    %79 = tpu.matmul %76, %78, %cst_42 {dimension_numbers = #tpu.dot_dimension_numbers<[1], [0], [0], [1], [0, 0, 1, 1], [], []>} : vector<128x24xbf16>, vector<24x8xbf16>, vector<128x8xf32> -> vector<128x8xf32>
    %80 = arith.addf %74, %79 : vector<128x8xf32>
    %81 = vector.shape_cast %80 : vector<128x8xf32> to vector<8x16x8xf32>
    %c0_43 = arith.constant 0 : index
    %c0_44 = arith.constant 0 : index
    %82 = vector.load %arg7[%c0_43, %c0_44] : memref<1x8xf32, #tpu.memory_space<vmem>>, vector<1x8xf32>
    %83 = vector.shape_cast %82 : vector<1x8xf32> to vector<1x1x8xf32>
    %84 = vector.broadcast %83 : vector<1x1x8xf32> to vector<8x16x8xf32>
    %85 = arith.mulf %81, %84 : vector<8x16x8xf32>
    %c0_45 = arith.constant 0 : index
    %c0_46 = arith.constant 0 : index
    %86 = vector.load %arg8[%c0_45, %c0_46] : memref<1x8xf32, #tpu.memory_space<vmem>>, vector<1x8xf32>
    %87 = vector.shape_cast %86 : vector<1x8xf32> to vector<1x1x8xf32>
    %88 = vector.broadcast %87 : vector<1x1x8xf32> to vector<8x16x8xf32>
    %89 = arith.addf %85, %88 : vector<8x16x8xf32>
    %c0_47 = arith.constant 0 : index
    %90 = arith.index_cast %1 : i32 to index
    %c0_48 = arith.constant 0 : index
    %c0_49 = arith.constant 0 : index
    %91 = vector.load %arg2[%c0_47, %90, %c0_48, %c0_49] : memref<1x16x16x4xbf16, #tpu.memory_space<vmem>>, vector<1x8x16x4xbf16>
    %92 = vector.shape_cast %91 : vector<1x8x16x4xbf16> to vector<8x16x4xbf16>
    %93 = vector.shape_cast %92 : vector<8x16x4xbf16> to vector<128x4xbf16>
    %c0_50 = arith.constant 0 : index
    %c0_51 = arith.constant 0 : index
    %94 = vector.load %arg9[%c0_50, %c0_51] : memref<4x8xbf16, #tpu.memory_space<vmem>>, vector<4x8xbf16>
    %cst_52 = arith.constant dense<0.000000e+00> : vector<128x8xf32>
    %95 = tpu.matmul %93, %94, %cst_52 {dimension_numbers = #tpu.dot_dimension_numbers<[1], [0], [0], [1], [0, 0, 1, 1], [], []>} : vector<128x4xbf16>, vector<4x8xbf16>, vector<128x8xf32> -> vector<128x8xf32>
    %96 = vector.shape_cast %95 : vector<128x8xf32> to vector<8x16x8xf32>
    %c0_53 = arith.constant 0 : index
    %c0_54 = arith.constant 0 : index
    %97 = vector.load %arg10[%c0_53, %c0_54] : memref<1x8xf32, #tpu.memory_space<vmem>>, vector<1x8xf32>
    %98 = vector.shape_cast %97 : vector<1x8xf32> to vector<1x1x8xf32>
    %99 = vector.broadcast %98 : vector<1x1x8xf32> to vector<8x16x8xf32>
    %100 = arith.mulf %96, %99 : vector<8x16x8xf32>
    %c0_55 = arith.constant 0 : index
    %c0_56 = arith.constant 0 : index
    %101 = vector.load %arg11[%c0_55, %c0_56] : memref<1x8xf32, #tpu.memory_space<vmem>>, vector<1x8xf32>
    %102 = vector.shape_cast %101 : vector<1x8xf32> to vector<1x1x8xf32>
    %103 = vector.broadcast %102 : vector<1x1x8xf32> to vector<8x16x8xf32>
    %104 = arith.addf %100, %103 : vector<8x16x8xf32>
    %105 = arith.addf %89, %104 : vector<8x16x8xf32>
    %cst_57 = arith.constant 0.000000e+00 : f32
    %106 = vector.broadcast %cst_57 : f32 to vector<8x16x8xf32>
    %107 = arith.maximumf %105, %106 : vector<8x16x8xf32>
    %108 = arith.truncf %107 : vector<8x16x8xf32> to vector<8x16x8xbf16>
    %c0_58 = arith.constant 0 : index
    %c0_59 = arith.constant 0 : index
    %c0_60 = arith.constant 0 : index
    %c0_61 = arith.constant 0 : index
    %109 = vector.load %arg12[%c0_58, %c0_59, %c0_60, %c0_61] : memref<1x8x16x8xbf16, #tpu.memory_space<vmem>>, vector<1x8x16x8xbf16>
    %110 = vector.shape_cast %109 : vector<1x8x16x8xbf16> to vector<8x16x8xbf16>
    %111 = vector.shape_cast %108 : vector<8x16x8xbf16> to vector<1x8x16x8xbf16>
    tpu.vector_store %arg12[%c0_58, %c0_59, %c0_60, %c0_61], %111 {strides = array<i32>} : memref<1x8x16x8xbf16, #tpu.memory_space<vmem>>, vector<1x8x16x8xbf16>,
    return
  }
  func.func @transform_0(%arg0: i32, %arg1: i32) -> (i32, i32, i32, i32) {
    %c0_i32 = arith.constant 0 : i32
    %c0_i32_0 = arith.constant 0 : i32
    %c0_i32_1 = arith.constant 0 : i32
    %c0_i32_2 = arith.constant 0 : i32
    return %arg0, %c0_i32, %c0_i32_0, %c0_i32_1 : i32, i32, i32, i32
  }
  func.func @transform_1(%arg0: i32, %arg1: i32) -> (i32, i32, i32) {
    %c0_i32 = arith.constant 0 : i32
    %c0_i32_0 = arith.constant 0 : i32
    %c0_i32_1 = arith.constant 0 : i32
    %c0_i32_2 = arith.constant 0 : i32
    return %c0_i32, %c0_i32_0, %c0_i32_1 : i32, i32, i32
  }
  func.func @transform_2(%arg0: i32, %arg1: i32) -> (i32, i32) {
    %c0_i32 = arith.constant 0 : i32
    %c0_i32_0 = arith.constant 0 : i32
    %c0_i32_1 = arith.constant 0 : i32
    return %c0_i32, %c0_i32_0 : i32, i32
  }
  func.func @transform_3(%arg0: i32, %arg1: i32) -> (i32, i32) {
    %c0_i32 = arith.constant 0 : i32
    %c0_i32_0 = arith.constant 0 : i32
    %c0_i32_1 = arith.constant 0 : i32
    return %c0_i32, %c0_i32_0 : i32, i32
  }
  func.func @transform_4(%arg0: i32, %arg1: i32) -> (i32, i32, i32) {
    %c0_i32 = arith.constant 0 : i32
    %c0_i32_0 = arith.constant 0 : i32
    %c0_i32_1 = arith.constant 0 : i32
    %c0_i32_2 = arith.constant 0 : i32
    return %c0_i32, %c0_i32_0, %c0_i32_1 : i32, i32, i32
  }
  func.func @transform_5(%arg0: i32, %arg1: i32) -> (i32, i32) {
    %c0_i32 = arith.constant 0 : i32
    %c0_i32_0 = arith.constant 0 : i32
    %c0_i32_1 = arith.constant 0 : i32
    return %c0_i32, %c0_i32_0 : i32, i32
  }
  func.func @transform_6(%arg0: i32, %arg1: i32) -> (i32, i32) {
    %c0_i32 = arith.constant 0 : i32
    %c0_i32_0 = arith.constant 0 : i32
    %c0_i32_1 = arith.constant 0 : i32
    return %c0_i32, %c0_i32_0 : i32, i32
  }
  func.func @transform_7(%arg0: i32, %arg1: i32) -> (i32, i32) {
    %c0_i32 = arith.constant 0 : i32
    %c0_i32_0 = arith.constant 0 : i32
    %c0_i32_1 = arith.constant 0 : i32
    return %c0_i32, %c0_i32_0 : i32, i32
  }
  func.func @transform_8(%arg0: i32, %arg1: i32) -> (i32, i32) {
    %c0_i32 = arith.constant 0 : i32
    %c0_i32_0 = arith.constant 0 : i32
    %c0_i32_1 = arith.constant 0 : i32
    return %c0_i32, %c0_i32_0 : i32, i32
  }
  func.func @transform_9(%arg0: i32, %arg1: i32) -> (i32, i32) {
    %c0_i32 = arith.constant 0 : i32
    %c0_i32_0 = arith.constant 0 : i32
    %c0_i32_1 = arith.constant 0 : i32
    return %c0_i32, %c0_i32_0 : i32, i32
  }
  func.func @transform_10(%arg0: i32, %arg1: i32) -> (i32, i32, i32, i32) {
    %c0_i32 = arith.constant 0 : i32
    %c0_i32_0 = arith.constant 0 : i32
    %c0_i32_1 = arith.constant 0 : i32
    return %arg0, %arg1, %c0_i32, %c0_i32_0 : i32, i32, i32, i32
  }
}

</mosaic_0001>

<bundles_post_ra>
// kernel: tpu_custom_call.1
= control target key start
LH: loop header
LB: loop body
LE: loop exit
PB: predicated region body
PF: predicated region fallthrough
CT: control target
= control target key end

     0   :  { %s3166_s13 = smov 0   ;;  %s3168_s14 = smov 0   ;;  %s4075_s0 = inlined_call_operand.vmem [shape: bf16[2,16,16,4], index: 0, kind: input, shape index: {}]   ;;  %s4076_s1 = inlined_call_operand.vmem [shape: bf16[3,12,8], index: 1, kind: input, shape index: {}]   ;;  %s4077_s2 = inlined_call_operand.vmem [shape: f32[1,8], index: 2, kind: input, shape index: {}]   ;;  %s4078_s3 = inlined_call_operand.vmem [shape: f32[1,8], index: 3, kind: input, shape index: {}]   ;;  %s4079_s4 = inlined_call_operand.vmem [shape: bf16[3,24,8], index: 4, kind: input, shape index: {}]   ;;  %s4080_s5 = inlined_call_operand.vmem [shape: f32[1,8], index: 5, kind: input, shape index: {}]   ;;  %s4081_s6 = inlined_call_operand.vmem [shape: f32[1,8], index: 6, kind: input, shape index: {}]   ;;  %s4082_s7 = inlined_call_operand.vmem [shape: bf16[4,8], index: 7, kind: input, shape index: {}]   ;;  %s4083_s8 = inlined_call_operand.vmem [shape: f32[1,8], index: 8, kind: input, shape index: {}]   ;;  %s4084_s9 = inlined_call_operand.vmem [shape: f32[1,8], index: 9, kind: input, shape index: {}]   ;;  %s4085_s10 = inlined_call_operand.vmem [shape: bf16[2,16,16,8], index: 10, kind: output, shape index: {}]  }
   0x1   :  { %s3170_s15 = smov 0   ;;  %s3172_s16 = smov 0  }
   0x2   :  { %s3174_s17 = smov 0  }
   0x3 LB: > { %s29_s18 = sadd.s32 1, %s3097_s15  ;;  %s32_s19 = sadd.s32 1, %s3101_s16  ;;  %s3105_s17 = sphi %s3174_s17, %s20_s17   ;;  %s3101_s16 = sphi %s3172_s16, %s4113_s16   ;;  %s3097_s15 = sphi %s3170_s15, %s4112_s15   ;;  %s3093_s14 = sphi %s3168_s14, %s4111_s14   ;;  %s3089_s13 = sphi %s3166_s13, %s4110_s13  }
   0x4   : > { %p30_p0 = scmp.ge.s32.totalorder %s29_s18, 2  ;;  %p2534_p1 = scmp.ge.s32.totalorder %s3105_s17, 1 }
   0x5   : > { %p326_p2 = scmp.lt.s32.totalorder %s3105_s17, 5 }
   0x6   : > { %s4115_s18 = smov (%p30_p0, %s29_s18), 0  ;;  %s4117_s19 = smov (!%p30_p0, %s32_s19), %s3101_s16 }
   0x7   : > { %p327_p3 = pnand %p2534_p1, %p326_p2  ;;  %p34_p4 = scmp.ge.s32.totalorder %s4117_s19, 2 }
   0x8   : > { %p369_p5 = scmp.lt.s32.totalorder (!%p327_p3), %s3093_s14, 1  ;;  %vm387_vm0 = vcmask (!%p327_p3), 31744   ;;  %v3107_v0 = vmov (!%p327_p3), 0   ;;  %s2676_s24 = sshll.u32 (!%p327_p3), %s3089_s13, 6  ;;  %v3050_v17 = vld [vmem:[%s4076_s1 + $0x8] sm:$0x3f] (!%p327_p3)  }
   0x9   : > { %s4119_s19 = smov (%p34_p4, %s4117_s19), 0  ;;  %330 = sbr.rel (%p327_p3) target bundleno = 945 (0x3b1), region = 60 }
   0xa   : > { %388 = vst.msk [vmem:[#allocation2] sm:$0xff] (!%p327_p3), %vm387_vm0, %v3107_v0  ;;  %389 = vst.msk [vmem:[#allocation2 + $0x8] sm:$0xff] (!%p327_p3), %vm387_vm0, %v3107_v0  ;;  %vm878_vm1 = vcmask (!%p327_p3), 1045504   ;;  %v3251_v19 = vld [vmem:[%s4076_s1] sm:$0x3f] (!%p327_p3)   ;;  %s3255_s29 = scalar_lea.vmem (!%p327_p3), [#allocation2], %s2676_s24 }
   0xb   : > { %391 = vst.msk [vmem:[#allocation2 + $0x90] sm:$0xff] (!%p327_p3), %vm387_vm0, %v3107_v0  ;;  %392 = vst.msk [vmem:[#allocation2 + $0x98] sm:$0xff] (!%p327_p3), %vm387_vm0, %v3107_v0  ;;  %2983 = vmatprep.subr.msk.bf16.mxu0 (!%p327_p3), %vm878_vm1, %v3050_v17  ;;  %v880_v18 = vsel (!%p327_p3), %vm878_vm1, %v3050_v17, 0  ;;  %vm699_vm2 = vcmask (!%p327_p3), 1047552   ;;  %vm700_vm3 = vsmask.f32 (!%p327_p3), 7424 }
   0xc   : > { %2768 = vmatpush3.bf16.msra.mxu0 (!%p327_p3), %v880_v18  ;;  %s3108_s30 = smov (!%p327_p3), 4   ;;  %vm3271_vm4 = vmand (!%p327_p3), %vm699_vm2, %vm700_vm3  ;;  %s3109_s11 = smov (!%p327_p3), 8   ;;  %vm648_vm5 = vcmask (!%p327_p3), 1040384   ;;  %vm649_vm6 = vsmask.f32 (!%p327_p3), 256  ;;  %vm822_vm8 = vcmask (!%p327_p3), 64512  }
   0xd   : > { %2984 = vmatprep.subr.msk.bf16.mxu0 (!%p327_p3), %vm878_vm1, %v3251_v19  ;;  %vm3361_vm7 = vmand (!%p327_p3), %vm648_vm5, %vm649_vm6  ;;  %vm857_vm9 = vcmask (!%p327_p3), 97280   ;;  %s3480_s21 = sshll.u32 (!%p327_p3), %s3089_s13, 3  ;;  %vm1703_vm6 = vcmask (!%p327_p3), 1043456   ;;  %s3110_s26 = smov (!%p327_p3), 16  }
   0xe   : > { %s2598_s22 = sadd.s32 (!%p327_p3), 4294967295, %s3480_s21  ;;  %p377_p6 = scmp.lt.s32.totalorder (!%p327_p3), %s3480_s21, 15 }
  0x10   : > { %s4121_s14 = smov (!%p369_p5, %s3093_s14), 1  ;;  %s4123_s21 = smov (!%p377_p6, %s3480_s21), 15 }
  0x11   : > { %s2675_s20 = sshll.u32 %s4121_s14, 7  ;;  %s2539_s13 = sshll.u32 %s4121_s14, 5 }
  0x12   : > { %s3208_s23 = scalar_lea.vmem %s4075_s0, %s2675_s20 }
  0x13   : > { %v3034_v1 = vld [vmem:[%s3208_s23] sm:$0xff]   ;;  %v3035_v2 = vld [vmem:[%s3208_s23 + $0x8] sm:$0xff]   ;;  %v3036_v3 = vld [vmem:[%s3208_s23 + $0x10] sm:$0xff]  }
  0x14   : > { %v3037_v4 = vld [vmem:[%s3208_s23 + $0x18] sm:$0xff]   ;;  %v3038_v5 = vld [vmem:[%s3208_s23 + $0x20] sm:$0xff]   ;;  %v3039_v6 = vld [vmem:[%s3208_s23 + $0x28] sm:$0xff]   ;;  %522 = vst.msk [vmem:[#allocation2 + $0x10] sm:$0xff] %vm387_vm0, %v3034_v1 }
  0x15   : > { %v3040_v7 = vld [vmem:[%s3208_s23 + $0x30] sm:$0xff]   ;;  %v3041_v8 = vld [vmem:[%s3208_s23 + $0x38] sm:$0xff]   ;;  %v3042_v9 = vld [vmem:[%s3208_s23 + $0x40] sm:$0xff]   ;;  %523 = vst.msk [vmem:[#allocation2 + $0x18] sm:$0xff] %vm387_vm0, %v3035_v2 }
  0x16   : > { %v3043_v10 = vld [vmem:[%s3208_s23 + $0x48] sm:$0xff]   ;;  %524 = vst.msk [vmem:[#allocation2 + $0x20] sm:$0xff] %vm387_vm0, %v3036_v3  ;;  %525 = vst.msk [vmem:[#allocation2 + $0x28] sm:$0xff] %vm387_vm0, %v3037_v4  ;;  %v3044_v11 = vld [vmem:[%s3208_s23 + $0x50] sm:$0xff]  }
  0x17   : > { %v3045_v12 = vld [vmem:[%s3208_s23 + $0x58] sm:$0xff]   ;;  %v3046_v13 = vld [vmem:[%s3208_s23 + $0x60] sm:$0xff]   ;;  %526 = vst.msk [vmem:[#allocation2 + $0x30] sm:$0xff] %vm387_vm0, %v3038_v5  ;;  %527 = vst.msk [vmem:[#allocation2 + $0x38] sm:$0xff] %vm387_vm0, %v3039_v6 }
  0x18   : > { %528 = vst.msk [vmem:[#allocation2 + $0x40] sm:$0xff] %vm387_vm0, %v3040_v7  ;;  %v3047_v14 = vld [vmem:[%s3208_s23 + $0x68] sm:$0xff]   ;;  %v3048_v15 = vld [vmem:[%s3208_s23 + $0x70] sm:$0xff]   ;;  %v3049_v16 = vld [vmem:[%s3208_s23 + $0x78] sm:$0xff]  }
  0x19   : > { %529 = vst.msk [vmem:[#allocation2 + $0x48] sm:$0xff] %vm387_vm0, %v3041_v8  ;;  %530 = vst.msk [vmem:[#allocation2 + $0x50] sm:$0xff] %vm387_vm0, %v3042_v9 }
  0x1a   : > { %531 = vst.msk [vmem:[#allocation2 + $0x58] sm:$0xff] %vm387_vm0, %v3043_v10  ;;  %532 = vst.msk [vmem:[#allocation2 + $0x60] sm:$0xff] %vm387_vm0, %v3044_v11 }
  0x1b   : > { %533 = vst.msk [vmem:[#allocation2 + $0x68] sm:$0xff] %vm387_vm0, %v3045_v12  ;;  %534 = vst.msk [vmem:[#allocation2 + $0x70] sm:$0xff] %vm387_vm0, %v3046_v13 }
  0x1c   : > { %535 = vst.msk [vmem:[#allocation2 + $0x78] sm:$0xff] %vm387_vm0, %v3047_v14  ;;  %536 = vst.msk [vmem:[#allocation2 + $0x80] sm:$0xff] %vm387_vm0, %v3048_v15 }
  0x1d   : > { %537 = vst.msk [vmem:[#allocation2 + $0x88] sm:$0xff] %vm387_vm0, %v3049_v16 }
  0x24   : > { %v541_v20 = vld [vmem:[%s3255_s29 + $0x8] sm:$0xff]  ;;  %v542_v21 = vld [vmem:[%s3255_s29 + $0x10] sm:$0xff]  ;;  %v3260_v22 = vld [vmem:[%s3255_s29 + $0x18] sm:$0xff] }
  0x25   : > { %728 = vrot.lane.b32.xlu0 %v541_v20, %s3108_s30  ;;  %v560_v23 = vshrl.u32 %v541_v20, 16  ;;  %v563_v24 = vshll.u32 %v541_v20, 16  ;;  %v567_v25 = vshrl.u32 %v542_v21, 16  ;;  %v570_v26 = vshll.u32 %v542_v21, 16  ;;  %v544_v27 = vld [vmem:[%s3255_s29 + $0x20] sm:$0xff]  ;;  %v545_v32 = vld [vmem:[%s3255_s29 + $0x28] sm:$0xff] }
  0x26   : > { %v574_v28 = vshrl.u32 %v3260_v22, 16  ;;  %v577_v29 = vshll.u32 %v3260_v22, 16  ;;  %v584_v35 = vshll.u32 %v544_v27, 16  ;;  %v591_v39 = vshll.u32 %v545_v32, 16  ;;  %v546_v47 = vld [vmem:[%s3255_s29 + $0x30] sm:$0xff]  ;;  %v547_v48 = vld [vmem:[%s3255_s29 + $0x38] sm:$0xff] }
  0x27   : > { %v665_v30 = vrot.slane %v563_v24, 1  ;;  %v667_v31 = vrot.slane %v570_v26, 1  ;;  %v581_v41 = vshrl.u32 %v544_v27, 16  ;;  %v588_v45 = vshrl.u32 %v545_v32, 16  ;;  %v548_v58 = vld [vmem:[%s3255_s29 + $0x40] sm:$0xff]  ;;  %v549_v62 = vld [vmem:[%s3255_s29 + $0x48] sm:$0xff] }
  0x28   : > { %v669_v34 = vrot.slane %v577_v29, 1  ;;  %v671_v42 = vrot.slane %v584_v35, 1  ;;  %v673_v46 = vrot.slane %v591_v39, 1  ;;  %v562_v49 = vrot.slane %v560_v23, 7  ;;  %v550_v8 = vld [vmem:[%s3255_s29 + $0x50] sm:$0xff] }
  0x29   : > { %730 = vrot.lane.b32.xlu0 %v542_v21, %s3108_s30  ;;  %v666_v36 = vor.u32 %v665_v30, %v560_v23  ;;  %v668_v37 = vor.u32 %v667_v31, %v567_v25  ;;  %v569_v50 = vrot.slane %v567_v25, 7  ;;  %v598_v52 = vshll.u32 %v546_v47, 16 }
  0x2a   : > { %v670_v38 = vor.u32 %v669_v34, %v574_v28  ;;  %v672_v51 = vor.u32 %v671_v42, %v581_v41  ;;  %v605_v53 = vshll.u32 %v547_v48, 16  ;;  %v576_v54 = vrot.slane %v574_v28, 7  ;;  %v3338_v42 = vld [vmem:[%s3255_s29 + $0x58] sm:$0xff] }
  0x2b   : > { %v703_v40 = vsel %vm3271_vm4, %v666_v36, 0  ;;  %v704_v43 = vsel %vm3271_vm4, %v668_v37, 0  ;;  %v583_v55 = vrot.slane %v581_v41, 7  ;;  %v674_v56 = vor.u32 %v673_v46, %v588_v45 }
  0x2c   : > { %764 = vrot.lane.b32.xlu1 %v703_v40, %s3109_s11  ;;  %v705_v44 = vsel %vm3271_vm4, %v670_v38, 0  ;;  %v595_v57 = vshrl.u32 %v546_v47, 16  ;;  %v590_v59 = vrot.slane %v588_v45, 7  ;;  %v602_v60 = vshrl.u32 %v547_v48, 16 }
  0x2d   : > { %732 = vrot.lane.b32.xlu0 %v3260_v22, %s3108_s30  ;;  %v609_v61 = vshrl.u32 %v548_v58, 16  ;;  %v3291_v63 = vor.u32 %v563_v24, %v562_v49  ;;  %v706_v0 = vsel %vm3271_vm4, %v672_v51, 0  ;;  %v616_v2 = vshrl.u32 %v549_v62, 16 }
  0x2e   : > { %v597_v1 = vrot.slane %v595_v57, 7  ;;  %v3296_v3 = vor.u32 %v570_v26, %v569_v50  ;;  %v604_v4 = vrot.slane %v602_v60, 7  ;;  %v675_v5 = vrot.slane %v598_v52, 1 }
  0x2f   : > { %v677_v6 = vrot.slane %v605_v53, 1  ;;  %v611_v7 = vrot.slane %v609_v61, 7  ;;  %v707_v9 = vsel %vm3271_vm4, %v674_v56, 0  ;;  %v618_v10 = vrot.slane %v616_v2, 7 }
  0x30   : > { %766 = vrot.lane.b32.xlu1 %v704_v43, %s3109_s11  ;;  %v623_v11 = vshrl.u32 %v550_v8, 16  ;;  %v3302_v12 = vor.u32 %v577_v29, %v576_v54  ;;  %v612_v13 = vshll.u32 %v548_v58, 16  ;;  %v3304_v14 = vor.u32 %v584_v35, %v583_v55  ;;  %v540_v29 = vld [vmem:[%s3255_s29] sm:$0xff] }
  0x31   : > { %768 = vrot.lane.b32.xlu0 %v705_v44, %s3109_s11  ;;  %v619_v15 = vshll.u32 %v549_v62, 16  ;;  %v3307_v17 = vor.u32 %v591_v39, %v590_v59  ;;  %v3309_v18 = vor.u32 %v598_v52, %v597_v1  ;;  %v676_v20 = vor.u32 %v675_v5, %v595_v57 }
  0x32   : > { %v625_v16 = vrot.slane %v623_v11, 7  ;;  %v3312_v21 = vor.u32 %v605_v53, %v604_v4  ;;  %v3314_v22 = vor.u32 %v612_v13, %v611_v7  ;;  %v678_v23 = vor.u32 %v677_v6, %v602_v60 }
  0x33   : > { %v626_v24 = vshll.u32 %v550_v8, 16  ;;  %v3316_v25 = vor.u32 %v619_v15, %v618_v10  ;;  %v679_v28 = vrot.slane %v612_v13, 1  ;;  %v681_v31 = vrot.slane %v619_v15, 1 }
  0x34   : > { %734 = vrot.lane.b32.xlu1 %v544_v27, %s3108_s30  ;;  %v708_v27 = vsel %vm3271_vm4, %v676_v20, 0  ;;  %v709_v30 = vsel %vm3271_vm4, %v678_v23, 0  ;;  %v556_v37 = vshll.u32 %v540_v29, 16  ;;  %v633_v45 = vshll.u32 %v3338_v42, 16 }
  0x35   : > { %736 = vrot.lane.b32.xlu0 %v545_v32, %s3108_s30  ;;  %v3319_v26 = vor.u32 %v626_v24, %v625_v16  ;;  %v553_v32 = vshrl.u32 %v540_v29, 16  ;;  %v680_v35 = vor.u32 %v679_v28, %v609_v61  ;;  %v682_v36 = vor.u32 %v681_v31, %v616_v2 }
  0x36   : > { %v683_v40 = vrot.slane %v626_v24, 1  ;;  %v663_v44 = vrot.slane %v556_v37, 1  ;;  %v685_v49 = vrot.slane %v633_v45, 1  ;;  %v652_v55 = vsel %vm3361_vm7, 0, %v3291_v63 }
  0x37   : > { %v555_v34 = vrot.slane %v553_v32, 7  ;;  %v710_v39 = vsel %vm3271_vm4, %v680_v35, 0  ;;  %v711_v41 = vsel %vm3271_vm4, %v682_v36, 0  ;;  %v654_v60 = vsel %vm3361_vm7, 0, %v3302_v12 }
  0x38   : > { %770 = vrot.lane.b32.xlu1 %v706_v0, %s3109_s11  ;;  %v684_v43 = vor.u32 %v683_v40, %v623_v11  ;;  %v1003_v2 = vsel %vm878_vm1, %v3251_v19, 0  ;;  %v656_v19 = vsel %vm3361_vm7, 0, %v3307_v17  ;;  %v657_v20 = vsel %vm3361_vm7, 0, %v3309_v18 }
  0x39   : > { %772 = vrot.lane.b32.xlu0 %v707_v9, %s3109_s11  ;;  %v3330_v38 = vor.u32 %v556_v37, %v555_v34  ;;  %v660_v18 = vsel %vm3361_vm7, 0, %v3316_v25 }
  0x3a   : > { %v712_v46 = vsel %vm3271_vm4, %v684_v43, 0 }
  0x3c   : > { %738 = vrot.lane.b32.xlu1 %v546_v47, %s3108_s30  ;;  %v664_v47 = vor.u32 %v663_v44, %v553_v32  ;;  %v659_v32 = vsel %vm3361_vm7, 0, %v3314_v22  ;;  %v661_v22 = vsel %vm3361_vm7, 0, %v3319_v26  ;;  %v651_v44 = vsel %vm3361_vm7, 0, %v3330_v38 }
  0x3d   : > { %740 = vrot.lane.b32.xlu0 %v547_v48, %s3108_s30  ;;  %v630_v48 = vshrl.u32 %v3338_v42, 16 }
  0x3e   : > { %v702_v50 = vsel %vm3271_vm4, %v664_v47, 0 }
  0x3f   : > { %v686_v51 = vor.u32 %v685_v49, %v630_v48  ;;  %v632_v38 = vrot.slane %v630_v48, 7 }
  0x40   : > { %774 = vrot.lane.b32.xlu1 %v708_v27, %s3109_s11 }
  0x41   : > { %776 = vrot.lane.b32.xlu0 %v709_v30, %s3109_s11  ;;  %v713_v52 = vsel %vm3271_vm4, %v686_v51, 0 }
  0x44   : > { %742 = vrot.lane.b32.xlu1 %v548_v58, %s3108_s30  ;;  %v653_v58 = vsel %vm3361_vm7, 0, %v3296_v3  ;;  %v3052_v3 = vld [vmem:[%s4076_s1 + $0x10] sm:$0x3f]  }
  0x45   : > { %744 = vrot.lane.b32.xlu0 %v549_v62, %s3108_s30  ;;  %v1129_v26 = vsel %vm878_vm1, %v3052_v3, 0 }
  0x48   : > { %778 = vrot.lane.b32.xlu1 %v710_v39, %s3109_s11 }
  0x49   : > { %780 = vrot.lane.b32.xlu0 %v711_v41, %s3109_s11 }
  0x4c   : > { %746 = vrot.lane.b32.xlu1 %v550_v8, %s3108_s30  ;;  %v655_v8 = vsel %vm3361_vm7, 0, %v3304_v14  ;;  %v658_v14 = vsel %vm3361_vm7, 0, %v3312_v21 }
  0x4d   : > { %726 = vrot.lane.b32.xlu0 %v540_v29, %s3108_s30 }
  0x50   : > { %782 = vrot.lane.b32.xlu1 %v712_v46, %s3109_s11 }
  0x51   : > { %748 = vrot.lane.b32.xlu0 %v3338_v42, %s3108_s30  ;;  %v3483_v42 = vstv %s2598_s22 }
  0x52   : > { %vm1349_vm12 = vcmp.ge.s32.totalorder %v3483_v42, 0  ;;  %vm1359_vm13 = vcmp.lt.s32.totalorder %v3483_v42, 16 }
  0x53   : > { %vm3517_vm15 = vmand %vm1349_vm12, %vm1359_vm13 }
  0x54   : > { %762 = vrot.lane.b32.xlu1 %v702_v50, %s3109_s11 }
  0x58   : > { %784 = vrot.lane.b32.xlu1 %v713_v52, %s3109_s11 }
  0x97   : > { %v729_v54 = vpop.permute.xlu0 %728 }
  0x98   : > { %v791_v57 = vsel %vm387_vm0, %v652_v55, %v729_v54  ;;  %v635_v54 = vor.u32 %v633_v45, %v632_v38  ;;  %v3488_v45 = vld [vmem:[%s4077_s2] ss:$0 sm:$0xff] }
  0x9a   : > { %v662_v55 = vsel %vm3361_vm7, 0, %v635_v54 }
  0x9b   : > { %v731_v56 = vpop.permute.xlu0 %730 }
  0x9c   : > { %v794_v63 = vsel %vm387_vm0, %v653_v58, %v731_v56 }
  0x9e   : > { %v765_v59 = vpop.permute.xlu1 %764 }
  0x9f   : > { %v3376_v61 = vsel %vm822_vm8, %v791_v57, %v765_v59  ;;  %v733_v62 = vpop.permute.xlu0 %732  ;;  %v1340_v59 = vadd.s32 1, %v3483_v42 }
  0xa0   : > { %2769 = vmatprep.mubr.msk.bf16.mxu0 %vm857_vm9, %v3376_v61  ;;  %v797_v0 = vsel %vm387_vm0, %v654_v60, %v733_v62 }
  0xa1   : > { %vm1350_vm10 = vcmp.ge.s32.totalorder %v1340_v59, 0  ;;  %vm1360_vm11 = vcmp.lt.s32.totalorder %v1340_v59, 16 }
  0xa2   : > { %v767_v1 = vpop.permute.xlu1 %766  ;;  %vm3507_vm14 = vmand %vm1350_vm10, %vm1360_vm11 }
  0xa3   : > { %v3388_v4 = vsel %vm822_vm8, %v794_v63, %v767_v1  ;;  %v769_v5 = vpop.permute.xlu0 %768 }
  0xa4   : > { %2770 = vmatmul.mubr.msk.bf16.vlgmr.msra.gmra.mrb[0].mxu0 %vm857_vm9, %v3388_v4  ;;  %v3393_v6 = vsel %vm822_vm8, %v797_v0, %v769_v5  ;;  %v1342_v5 = vadd.s32 3, %v3483_v42 }
  0xa5   : > { %2790 = vmatpush3.bf16.msra.mxu0 %v1003_v2  ;;  %2773 = vmatprep.mubr.msk.bf16.mxu0 %vm857_vm9, %v3393_v6 }
  0xa6   : > { %v735_v7 = vpop.permute.xlu1 %734  ;;  %2985 = vmatprep.subr.msk.bf16.mxu0 %vm878_vm1, %v3052_v3  ;;  %vm1352_vm1 = vcmp.ge.s32.totalorder %v1342_v5, 0  ;;  %vm1362_vm2 = vcmp.lt.s32.totalorder %v1342_v5, 16 }
  0xa7   : > { %v737_v9 = vpop.permute.xlu0 %736  ;;  %v800_v11 = vsel %vm387_vm0, %v655_v8, %v735_v7  ;;  %vm3552_vm10 = vmand %vm1352_vm1, %vm1362_vm2 }
  0xa8   : > { %v803_v10 = vsel %vm387_vm0, %v656_v19, %v737_v9  ;;  %v1341_v19 = vadd.s32 2, %v3483_v42 }
  0xaa   : > { %v771_v12 = vpop.permute.xlu1 %770  ;;  %vm1351_vm3 = vcmp.ge.s32.totalorder %v1341_v19, 0  ;;  %vm1361_vm5 = vcmp.lt.s32.totalorder %v1341_v19, 16 }
  0xab   : > { %v832_v13 = vsel %vm822_vm8, %v800_v11, %v771_v12  ;;  %v773_v15 = vpop.permute.xlu0 %772  ;;  %v3053_v11 = vld [vmem:[%s4079_s4 + $0xc] sm:$0xff]   ;;  %vm3565_vm11 = vmand %vm1351_vm3, %vm1361_vm5 }
  0xac   : > { %2774 = vmatmul.mubr.msk.bf16.gmra.mrb[4].mxu0 %vm857_vm9, %v832_v13  ;;  %v834_v16 = vsel %vm822_vm8, %v803_v10, %v773_v15  ;;  %2833 = vmatprep.subr.bf16.mxu1 %v3053_v11  ;;  %v3602_v10 = vadd.s32 9, %v3483_v42 }
  0xad   : > { %2777 = vmatprep.mubr.msk.bf16.mxu0 %vm857_vm9, %v834_v16  ;;  %2834 = vmatpush3.bf16.msra.mxu1 %v3053_v11 }
  0xae   : > { %v739_v17 = vpop.permute.xlu1 %738 }
  0xaf   : > { %v741_v23 = vpop.permute.xlu0 %740  ;;  %v806_v27 = vsel %vm387_vm0, %v657_v20, %v739_v17  ;;  %v3522_v17 = vadd.s32 5, %v3483_v42 }
  0xb0   : > { %v809_v24 = vsel %vm387_vm0, %v658_v14, %v741_v23  ;;  %v3525_v23 = vadd.s32 4, %v3483_v42 }
  0xb1   : > { %vm1364_vm12 = vcmp.lt.s32.totalorder %v3522_v17, 16 }
  0xb2   : > { %v775_v28 = vpop.permute.xlu1 %774  ;;  %vm1353_vm13 = vcmp.ge.s32.totalorder %v3525_v23, 0 }
  0xb3   : > { %v836_v29 = vsel %vm822_vm8, %v806_v27, %v775_v28  ;;  %v777_v30 = vpop.permute.xlu0 %776 }
  0xb4   : > { %2778 = vmatmul.mubr.msk.bf16.gmra.mrb[8].mxu0 %vm857_vm9, %v836_v29  ;;  %v838_v31 = vsel %vm822_vm8, %v809_v24, %v777_v30 }
  0xb5   : > { %2781 = vmatprep.mubr.msk.bf16.mxu0 %vm857_vm9, %v838_v31 }
  0xb6   : > { %v743_v21 = vpop.permute.xlu1 %742 }
  0xb7   : > { %v745_v34 = vpop.permute.xlu0 %744  ;;  %v812_v36 = vsel %vm387_vm0, %v659_v32, %v743_v21 }
  0xb8   : > { %v815_v35 = vsel %vm387_vm0, %v660_v18, %v745_v34  ;;  %v3054_v34 = vld [vmem:[%s4079_s4 + $0x14] ss:$0 sps:$4 sm:$0xff]  }
  0xb9   : > { %2986 = vmatprep.subr.msk.bf16.mxu1 %vm1703_vm6, %v3054_v34 }
  0xba   : > { %v779_v37 = vpop.permute.xlu1 %778 }
  0xbb   : > { %v840_v39 = vsel %vm822_vm8, %v812_v36, %v779_v37  ;;  %v781_v40 = vpop.permute.xlu0 %780 }
  0xbc   : > { %2782 = vmatmul.mubr.msk.bf16.gmra.mrb[12].mxu0 %vm857_vm9, %v840_v39  ;;  %v842_v41 = vsel %vm822_vm8, %v815_v35, %v781_v40 }
  0xbd   : > { %2785 = vmatprep.mubr.msk.bf16.mxu0 %vm857_vm9, %v842_v41 }
  0xbe   : > { %v747_v25 = vpop.permute.xlu1 %746 }
  0xbf   : > { %v727_v43 = vpop.permute.xlu0 %726  ;;  %v818_v46 = vsel %vm387_vm0, %v661_v22, %v747_v25 }
  0xc0   : > { %v788_v50 = vsel %vm387_vm0, %v651_v44, %v727_v43 }
  0xc2   : > { %v783_v47 = vpop.permute.xlu1 %782 }
  0xc3   : > { %v844_v49 = vsel %vm822_vm8, %v818_v46, %v783_v47  ;;  %v749_v56 = vpop.permute.xlu0 %748  ;;  %v3557_v47 = vadd.s32 7, %v3483_v42 }
  0xc4   : > { %2786 = vmatmul.mubr.msk.bf16.gmra.mrb[16].mxu0 %vm857_vm9, %v844_v49  ;;  %v821_v57 = vsel %vm387_vm0, %v662_v55, %v749_v56  ;;  %v3575_v55 = vld [vmem:[%s4079_s4] sm:$0xff]  }
  0xc5   : > { %vm1366_vm1 = vcmp.lt.s32.totalorder %v3557_v47, 16 }
  0xc6   : > { %v763_v51 = vpop.permute.xlu1 %762 }
  0xc7   : > { %v824_v52 = vsel %vm822_vm8, %v788_v50, %v763_v51 }
  0xc8   : > { %2791 = vmatprep.mubr.msk.bf16.mxu0 %vm857_vm9, %v824_v52 }
  0xca   : > { %v785_v58 = vpop.permute.xlu1 %784 }
  0xcb   : > { %v846_v48 = vsel %vm822_vm8, %v821_v57, %v785_v58 }
  0xcc   : > { %2792 = vmatmul.mubr.msk.bf16.vlgmr.msra.gmra.mrb[0].mxu0 %vm857_vm9, %v3376_v61  ;;  %v3494_v61 = vld [vmem:[%s4078_s3] ss:$0 sm:$0xff] }
  0xcd   : > { %2812 = vmatpush3.bf16.msra.mxu0 %v1129_v26  ;;  %2795 = vmatprep.mubr.msk.bf16.mxu0 %vm857_vm9, %v3388_v4 }
  0xd4   : > { %2796 = vmatmul.mubr.msk.bf16.gmra.mrb[4].mxu0 %vm857_vm9, %v3393_v6 }
  0xd5   : > { %2799 = vmatprep.mubr.msk.bf16.mxu0 %vm857_vm9, %v832_v13 }
  0xdc   : > { %2800 = vmatmul.mubr.msk.bf16.gmra.mrb[8].mxu0 %vm857_vm9, %v834_v16 }
  0xdd   : > { %2803 = vmatprep.mubr.msk.bf16.mxu0 %vm857_vm9, %v836_v29 }
  0xe4   : > { %2804 = vmatmul.mubr.msk.bf16.gmra.mrb[12].mxu0 %vm857_vm9, %v838_v31 }
  0xe5   : > { %2807 = vmatprep.mubr.msk.bf16.mxu0 %vm857_vm9, %v840_v39 }
  0xec   : > { %2808 = vmatmul.mubr.msk.bf16.gmra.mrb[16].mxu0 %vm857_vm9, %v842_v41 }
  0xed   : > { %2813 = vmatprep.mubr.msk.bf16.mxu0 %vm857_vm9, %v3388_v4 }
  0xf4   : > { %2814 = vmatmul.mubr.msk.bf16.vlgmr.msra.gmra.mrb[0].mxu0 %vm857_vm9, %v3393_v6 }
  0xf5   : > { %2817 = vmatprep.mubr.msk.bf16.mxu0 %vm857_vm9, %v832_v13 }
  0xfc   : > { %2818 = vmatmul.mubr.msk.bf16.gmra.mrb[4].mxu0 %vm857_vm9, %v834_v16 }
  0xfd   : > { %2821 = vmatprep.mubr.msk.bf16.mxu0 %vm857_vm9, %v836_v29 }
 0x104   : > { %2822 = vmatmul.mubr.msk.bf16.gmra.mrb[8].mxu0 %vm857_vm9, %v838_v31 }
 0x105   : > { %2825 = vmatprep.mubr.msk.bf16.mxu0 %vm857_vm9, %v840_v39 }
 0x10c   : > { %2826 = vmatmul.mubr.msk.bf16.gmra.mrb[12].mxu0 %vm857_vm9, %v842_v41 }
 0x10d   : > { %2829 = vmatprep.mubr.msk.bf16.mxu0 %vm857_vm9, %v844_v49  ;;  %v3560_v49 = vadd.s32 6, %v3483_v42 }
 0x10f   : > { %vm1355_vm2 = vcmp.ge.s32.totalorder %v3560_v49, 0  ;;  %vm1365_vm3 = vcmp.lt.s32.totalorder %v3560_v49, 16 }
 0x114   : > { %2830 = vmatmul.mubr.msk.bf16.gmra.mrb[16].mxu0 %vm857_vm9, %v846_v48  ;;  %vm1354_vm9 = vcmp.ge.s32.totalorder %v3522_v17, 0 }
 0x115   : > { %vm3613_vm5 = vmand %vm1354_vm9, %vm1364_vm12  ;;  %vm1358_vm9 = vcmp.ge.s32.totalorder %v3602_v10, 0 }
 0x1c7   : > { %v2815_v60 = vpop.f32.mrb[0].mxu0 }
 0x1c8   : > { %v1273_v62 = vmul.f32 %v2815_v60, %v3488_v45  ;;  %v1165_v63 = vpop.f32.mrb[1].mxu0 }
 0x1c9   : > { %v1271_v0 = vmul.f32 %v3488_v45, %v1165_v63  ;;  %v2816_v1 = vpop.f32.mrb[2].mxu0 }
 0x1ca   : > { %v1300_v2 = vadd.f32 %v3494_v61, %v1273_v62  ;;  %v1274_v3 = vmul.f32 %v2816_v1, %v3488_v45  ;;  %v1168_v4 = vpop.f32.mrb[3].mxu0  ;;  %v1705_v1 = vsel %vm1703_vm6, %v3054_v34, 0 }
 0x1cb   : > { %v1298_v6 = vadd.f32 %v3494_v61, %v1271_v0  ;;  %v1272_v7 = vmul.f32 %v3488_v45, %v1168_v4  ;;  %2836 = vmatpush3.bf16.msra.mxu1 %v1705_v1 }
 0x1cc   : > { %v1320_v8 = vmax.f32 %v1300_v2, 0.0  ;;  %v1301_v9 = vadd.f32 %v3494_v61, %v1274_v3  ;;  %2853 = vmatprep.subr.bf16.mxu1 %v3575_v55 }
 0x1cd   : > { %v1318_v12 = vmax.f32 %v1298_v6, 0.0  ;;  %v1299_v13 = vadd.f32 %v3494_v61, %v1272_v7 }
 0x1ce   : > { %v1321_v16 = vmax.f32 %v1301_v9, 0.0  ;;  %v1401_v28 = vsel %vm3507_vm14, %v1320_v8, 0.0 }
 0x1cf   : > { %v1319_v14 = vmax.f32 %v1299_v13, 0.0  ;;  %v2819_v20 = vpop.f32.mrb[4].mxu0  ;;  %v1399_v30 = vsel %vm3517_vm15, %v1318_v12, 0.0 }
 0x1d0   : > { %v1277_v24 = vmul.f32 %v2819_v20, %v3488_v45  ;;  %v1181_v27 = vpop.f32.mrb[5].mxu0  ;;  %v1402_v29 = vsel %vm3507_vm14, %v1321_v16, 0.0  ;;  %vm1363_vm14 = vcmp.lt.s32.totalorder %v3525_v23, 16 }
 0x1d1   : > { %v1275_v31 = vmul.f32 %v3488_v45, %v1181_v27  ;;  %v2820_v21 = vpop.f32.mrb[6].mxu0  ;;  %v1420_v18 = vpack.c.bf16 %v1402_v29, %v1401_v28  ;;  %v1400_v32 = vsel %vm3517_vm15, %v1319_v14, 0.0  ;;  %vm1356_vm15 = vcmp.ge.s32.totalorder %v3557_v47, 0 }
 0x1d2   : > { %v1304_v35 = vadd.f32 %v3494_v61, %v1277_v24  ;;  %v1278_v36 = vmul.f32 %v2820_v21, %v3488_v45  ;;  %v1184_v37 = vpop.f32.mrb[7].mxu0  ;;  %v3543_v39 = vpack.c.bf16 %v1400_v32, %v1399_v30 }
 0x1d3   : > { %v1302_v40 = vadd.f32 %v3494_v61, %v1275_v31  ;;  %v1276_v41 = vmul.f32 %v3488_v45, %v1184_v37  ;;  %1571 = vrot.lane.b32.xlu0 %v1420_v18, %s3109_s11  ;;  %v1437_v25 = vshrl.u32 %v1420_v18, 16  ;;  %v1440_v22 = vshll.u32 %v1420_v18, 16 }
 0x1d4   : > { %v1324_v43 = vmax.f32 %v1304_v35, 0.0  ;;  %v1305_v44 = vadd.f32 %v3494_v61, %v1278_v36  ;;  %v3631_v31 = vadd.s32 8, %v3483_v42 }
 0x1d5   : > { %v1322_v50 = vmax.f32 %v1302_v40, 0.0  ;;  %v1303_v51 = vadd.f32 %v3494_v61, %v1276_v41  ;;  %v1521_v52 = vrot.slane %v1440_v22, 1  ;;  %v1439_v26 = vrot.slane %v1437_v25, 7 }
 0x1d6   : > { %v1325_v54 = vmax.f32 %v1305_v44, 0.0  ;;  %v1405_v48 = vsel %vm3552_vm10, %v1324_v43, 0.0  ;;  %vm1357_vm12 = vcmp.ge.s32.totalorder %v3631_v31, 0 }
 0x1d7   : > { %v1323_v56 = vmax.f32 %v1303_v51, 0.0  ;;  %v2823_v57 = vpop.f32.mrb[8].mxu0  ;;  %v1522_v58 = vor.u32 %v1521_v52, %v1437_v25  ;;  %v3579_v59 = vor.u32 %v1440_v22, %v1439_v26  ;;  %v1403_v63 = vsel %vm3565_vm11, %v1322_v50, 0.0 }
 0x1d8   : > { %v1281_v60 = vmul.f32 %v2823_v57, %v3488_v45  ;;  %v1197_v62 = vpop.f32.mrb[9].mxu0  ;;  %v1406_v0 = vsel %vm3552_vm10, %v1325_v54, 0.0  ;;  %vm3623_vm10 = vmand %vm1353_vm13, %vm1363_vm14  ;;  %vm1367_vm13 = vcmp.lt.s32.totalorder %v3631_v31, 16 }
 0x1d9   : > { %v1279_v2 = vmul.f32 %v3488_v45, %v1197_v62  ;;  %v2824_v3 = vpop.f32.mrb[10].mxu0  ;;  %v1550_v4 = vsel %vm3271_vm4, %v1522_v58, 0  ;;  %v1404_v5 = vsel %vm3565_vm11, %v1323_v56, 0.0  ;;  %v3594_v6 = vpack.c.bf16 %v1406_v0, %v1405_v48  ;;  %vm3671_vm14 = vmand %vm1356_vm15, %vm1366_vm1 }
 0x1da   : > { %v1308_v7 = vadd.f32 %v3494_v61, %v1281_v60  ;;  %v1282_v19 = vmul.f32 %v2824_v3, %v3488_v45  ;;  %1601 = vrot.lane.b32.xlu0 %v1550_v4, %s3110_s26  ;;  %v1200_v8 = vpop.f32.mrb[11].mxu0  ;;  %v1421_v9 = vpack.c.bf16 %v1404_v5, %v1403_v63  ;;  %vm1368_vm11 = vcmp.lt.s32.totalorder %v3602_v10, 16  ;;  %vm3731_vm1 = vmand %vm1357_vm12, %vm1367_vm13 }
 0x1db   : > { %v1306_v11 = vadd.f32 %v3494_v61, %v1279_v2  ;;  %v1280_v12 = vmul.f32 %v3488_v45, %v1200_v8  ;;  %v1451_v13 = vshrl.u32 %v3594_v6, 16  ;;  %v1454_v15 = vshll.u32 %v3594_v6, 16  ;;  %vm3722_vm15 = vmand %vm1358_vm9, %vm1368_vm11 }
 0x1dc   : > { %v1328_v14 = vmax.f32 %v1308_v7, 0.0  ;;  %v1309_v20 = vadd.f32 %v3494_v61, %v1282_v19  ;;  %1573 = vrot.lane.b32.xlu1 %v1421_v9, %s3109_s11  ;;  %v1444_v24 = vshrl.u32 %v1421_v9, 16  ;;  %v1447_v27 = vshll.u32 %v1421_v9, 16 }
 0x1dd   : > { %v1326_v17 = vmax.f32 %v1306_v11, 0.0  ;;  %v1307_v29 = vadd.f32 %v3494_v61, %v1280_v12  ;;  %v1525_v30 = vrot.slane %v1454_v15, 1  ;;  %v1453_v18 = vrot.slane %v1451_v13, 7 }
 0x1de   : > { %v1329_v21 = vmax.f32 %v1309_v20, 0.0  ;;  %1575 = vrot.lane.b32.xlu0 %v3594_v6, %s3109_s11  ;;  %v1523_v32 = vrot.slane %v1447_v27, 1  ;;  %v1446_v23 = vrot.slane %v1444_v24, 7  ;;  %v1409_v37 = vsel %vm3613_vm5, %v1328_v14, 0.0 }
 0x1df   : > { %v1327_v34 = vmax.f32 %v1307_v29, 0.0  ;;  %v2827_v35 = vpop.f32.mrb[12].mxu0  ;;  %v1526_v36 = vor.u32 %v1525_v30, %v1451_v13  ;;  %v1407_v40 = vsel %vm3623_vm10, %v1326_v17, 0.0  ;;  %v1430_v19 = vshrl.u32 %v3543_v39, 16 }
 0x1e0   : > { %v1285_v41 = vmul.f32 %v2827_v35, %v3488_v45  ;;  %v1213_v42 = vpop.f32.mrb[13].mxu0  ;;  %v1524_v25 = vor.u32 %v1523_v32, %v1444_v24  ;;  %v1410_v22 = vsel %vm3613_vm5, %v1329_v21, 0.0  ;;  %v3644_v43 = vor.u32 %v1447_v27, %v1446_v23  ;;  %vm3682_vm5 = vmand %vm1355_vm2, %vm1365_vm3 }
 0x1e1   : > { %v1283_v44 = vmul.f32 %v3488_v45, %v1213_v42  ;;  %v2828_v46 = vpop.f32.mrb[14].mxu0  ;;  %v1552_v50 = vsel %vm3271_vm4, %v1526_v36, 0  ;;  %v3649_v51 = vpack.c.bf16 %v1410_v22, %v1409_v37  ;;  %v1408_v52 = vsel %vm3623_vm10, %v1327_v34, 0.0 }
 0x1e2   : > { %v1312_v26 = vadd.f32 %v3494_v61, %v1285_v41  ;;  %v1286_v38 = vmul.f32 %v2828_v46, %v3488_v45  ;;  %1605 = vrot.lane.b32.xlu0 %v1552_v50, %s3110_s26  ;;  %v1216_v54 = vpop.f32.mrb[15].mxu0  ;;  %v1551_v56 = vsel %vm3271_vm4, %v1524_v25, 0  ;;  %v3660_v57 = vpack.c.bf16 %v1408_v52, %v1407_v40  ;;  %v3056_v25 = vld [vmem:[%s4079_s4 + $0x8] ss:$0 sps:$4 sm:$0xff]  }
 0x1e3   : > { %v1310_v58 = vadd.f32 %v3494_v61, %v1283_v44  ;;  %v1284_v48 = vmul.f32 %v3488_v45, %v1216_v54  ;;  %1603 = vrot.lane.b32.xlu1 %v1551_v56, %s3110_s26  ;;  %v1465_v60 = vshrl.u32 %v3649_v51, 16  ;;  %v1468_v62 = vshll.u32 %v3649_v51, 16 }
 0x1e4   : > { %v1332_v0 = vmax.f32 %v1312_v26, 0.0  ;;  %v1313_v1 = vadd.f32 %v3494_v61, %v1286_v38  ;;  %v1458_v2 = vshrl.u32 %v3660_v57, 16  ;;  %v1461_v3 = vshll.u32 %v3660_v57, 16 }
 0x1e5   : > { %v1330_v47 = vmax.f32 %v1310_v58, 0.0  ;;  %v1311_v5 = vadd.f32 %v3494_v61, %v1284_v48  ;;  %v1529_v7 = vrot.slane %v1468_v62, 1  ;;  %v1467_v9 = vrot.slane %v1465_v60, 7 }
 0x1e6   : > { %v1333_v8 = vmax.f32 %v1313_v1, 0.0  ;;  %1579 = vrot.lane.b32.xlu0 %v3649_v51, %s3109_s11  ;;  %v1527_v11 = vrot.slane %v1461_v3, 1  ;;  %v1460_v12 = vrot.slane %v1458_v2, 7  ;;  %v1413_v14 = vsel %vm3671_vm14, %v1332_v0, 0.0 }
 0x1e7   : > { %v1331_v49 = vmax.f32 %v1311_v5, 0.0  ;;  %1577 = vrot.lane.b32.xlu1 %v3660_v57, %s3109_s11  ;;  %v2831_v13 = vpop.f32.mrb[16].mxu0  ;;  %v1530_v16 = vor.u32 %v1529_v7, %v1465_v60  ;;  %v1411_v20 = vsel %vm3682_vm5, %v1330_v47, 0.0  ;;  %v3703_v29 = vor.u32 %v1454_v15, %v1453_v18 }
 0x1e8   : > { %v1289_v24 = vmul.f32 %v2831_v13, %v3488_v45  ;;  %v1229_v27 = vpop.f32.mrb[17].mxu0  ;;  %v1528_v28 = vor.u32 %v1527_v11, %v1458_v2  ;;  %v1414_v17 = vsel %vm3671_vm14, %v1333_v8, 0.0  ;;  %v1432_v58 = vrot.slane %v1430_v19, 7 }
 0x1e9   : > { %v1287_v30 = vmul.f32 %v3488_v45, %v1229_v27  ;;  %v2832_v21 = vpop.f32.mrb[18].mxu0  ;;  %v1554_v32 = vsel %vm3271_vm4, %v1530_v16, 0  ;;  %v1426_v23 = vpack.c.bf16 %v1414_v17, %v1413_v14  ;;  %v1412_v34 = vsel %vm3682_vm5, %v1331_v49, 0.0 }
 0x1ea   : > { %v1316_v35 = vadd.f32 %v3494_v61, %v1289_v24  ;;  %v1290_v36 = vmul.f32 %v2832_v21, %v3488_v45  ;;  %1609 = vrot.lane.b32.xlu0 %v1554_v32, %s3110_s26  ;;  %v1232_v37 = vpop.f32.mrb[19].mxu0  ;;  %v1553_v6 = vsel %vm3271_vm4, %v1528_v28, 0  ;;  %v1425_v15 = vpack.c.bf16 %v1412_v34, %v1411_v20 }
 0x1eb   : > { %v1314_v18 = vadd.f32 %v3494_v61, %v1287_v30  ;;  %v1288_v40 = vmul.f32 %v3488_v45, %v1232_v37  ;;  %1607 = vrot.lane.b32.xlu1 %v1553_v6, %s3110_s26  ;;  %v1479_v41 = vshrl.u32 %v1426_v23, 16  ;;  %v1482_v42 = vshll.u32 %v1426_v23, 16  ;;  %v3057_v45 = vld [vmem:[%s4079_s4 + $0x18] sm:$0xff]  }
 0x1ec   : > { %v1336_v22 = vmax.f32 %v1316_v35, 0.0  ;;  %v1317_v44 = vadd.f32 %v3494_v61, %v1290_v36  ;;  %v1472_v46 = vshrl.u32 %v1425_v15, 16  ;;  %v1475_v50 = vshll.u32 %v1425_v15, 16 }
 0x1ed   : > { %v1334_v52 = vmax.f32 %v1314_v18, 0.0  ;;  %v1315_v10 = vadd.f32 %v3494_v61, %v1288_v40  ;;  %v1533_v26 = vrot.slane %v1482_v42, 1  ;;  %v1481_v38 = vrot.slane %v1479_v41, 7 }
 0x1ee   : > { %v1337_v54 = vmax.f32 %v1317_v44, 0.0  ;;  %1583 = vrot.lane.b32.xlu0 %v1426_v23, %s3109_s11  ;;  %v1531_v56 = vrot.slane %v1475_v50, 1  ;;  %v1474_v57 = vrot.slane %v1472_v46, 7  ;;  %v1417_v61 = vsel %vm3722_vm15, %v1336_v22, 0.0 }
 0x1ef   : > { %v1335_v48 = vmax.f32 %v1315_v10, 0.0  ;;  %1581 = vrot.lane.b32.xlu1 %v1425_v15, %s3109_s11  ;;  %v1534_v31 = vor.u32 %v1533_v26, %v1479_v41  ;;  %v1415_v60 = vsel %vm3731_vm1, %v1334_v52, 0.0  ;;  %v3748_v1 = vor.u32 %v1468_v62, %v1467_v9 }
 0x1f0   : > { %v1532_v63 = vor.u32 %v1531_v56, %v1472_v46  ;;  %v1418_v0 = vsel %vm3722_vm15, %v1337_v54, 0.0  ;;  %v3750_v2 = vor.u32 %v1461_v3, %v1460_v12  ;;  %v3756_v7 = vor.u32 %v1482_v42, %v1481_v38 }
 0x1f1   : > { %v1556_v4 = vsel %vm3271_vm4, %v1534_v31, 0  ;;  %v1416_v47 = vsel %vm3731_vm1, %v1335_v48, 0.0  ;;  %v1428_v5 = vpack.c.bf16 %v1418_v0, %v1417_v61  ;;  %v1433_v51 = vshll.u32 %v3543_v39, 16 }
 0x1f2   : > { %1613 = vrot.lane.b32.xlu0 %v1556_v4, %s3110_s26  ;;  %v1555_v8 = vsel %vm3271_vm4, %v1532_v63, 0  ;;  %v1427_v11 = vpack.c.bf16 %v1416_v47, %v1415_v60  ;;  %v3763_v3 = vor.u32 %v1475_v50, %v1474_v57  ;;  %vm1649_vm2 = vcmask 130048  }
 0x1f3   : > { %1611 = vrot.lane.b32.xlu1 %v1555_v8, %s3110_s26  ;;  %v1493_v62 = vshrl.u32 %v1428_v5, 16  ;;  %v3765_v49 = vor.u32 %v1433_v51, %v1432_v58  ;;  %v1496_v16 = vshll.u32 %v1428_v5, 16  ;;  %v1519_v24 = vrot.slane %v1433_v51, 1 }
 0x1f4   : > { %v1486_v9 = vshrl.u32 %v1427_v11, 16  ;;  %v1489_v12 = vshll.u32 %v1427_v11, 16  ;;  %vm1686_vm3 = vcmask 195584   ;;  %v1511_v18 = vsel %vm3361_vm7, 0, %v3644_v43 }
 0x1f5   : > { %v1495_v13 = vrot.slane %v1493_v62, 7  ;;  %v1520_v21 = vor.u32 %v1519_v24, %v1430_v19  ;;  %v1537_v32 = vrot.slane %v1496_v16, 1  ;;  %v1816_v50 = vsel %vm1703_vm6, %v3056_v25, 0  ;;  %v3058_v24 = vld [vmem:[%s4079_s4 + $0x20] ss:$0 sps:$4 sm:$0xff]  }
 0x1f6   : > { %1569 = vrot.lane.b32.xlu0 %v3543_v39, %s3109_s11  ;;  %v1535_v14 = vrot.slane %v1489_v12, 1  ;;  %v1488_v20 = vrot.slane %v1486_v9, 7  ;;  %v1510_v39 = vsel %vm3361_vm7, 0, %v3579_v59  ;;  %v1512_v59 = vsel %vm3361_vm7, 0, %v3703_v29 }
 0x1f7   : > { %1585 = vrot.lane.b32.xlu1 %v1427_v11, %s3109_s11  ;;  %v3770_v27 = vor.u32 %v1496_v16, %v1495_v13  ;;  %v1549_v23 = vsel %vm3271_vm4, %v1520_v21, 0  ;;  %v1538_v34 = vor.u32 %v1537_v32, %v1493_v62  ;;  %v1513_v52 = vsel %vm3361_vm7, 0, %v3750_v2 }
 0x1f8   : > { %v1536_v28 = vor.u32 %v1535_v14, %v1486_v9  ;;  %v3772_v17 = vor.u32 %v1489_v12, %v1488_v20  ;;  %v1515_v31 = vsel %vm3361_vm7, 0, %v3763_v3  ;;  %v1516_v61 = vsel %vm3361_vm7, 0, %v3756_v7 }
 0x1f9   : > { %v1558_v35 = vsel %vm3271_vm4, %v1538_v34, 0  ;;  %v1509_v62 = vsel %vm3361_vm7, 0, %v3765_v49  ;;  %v1518_v16 = vsel %vm3361_vm7, 0, %v3770_v27  ;;  %v1931_v53 = vsel %vm1703_vm6, %v3058_v24, 0  ;;  %v2111_v27 = vld [vmem:[%s4082_s7] sm:$0x3] }
 0x1fa   : > { %1587 = vrot.lane.b32.xlu0 %v1428_v5, %s3109_s11  ;;  %v1557_v30 = vsel %vm3271_vm4, %v1536_v28, 0  ;;  %s3789_s11 = scalar_lea.vmem %s3208_s23, %s2676_s24  ;;  %v1517_v8 = vsel %vm3361_vm7, 0, %v3772_v17  ;;  %vm2176_vm4 = vcmask 1041408  }
 0x1fb   : > { %1615 = vrot.lane.b32.xlu1 %v1557_v30, %s3110_s26  ;;  %v2178_v28 = vsel %vm2176_vm4, %v2111_v27, 0  ;;  %v3059_v17 = vld [vmem:[%s3789_s11] sm:$0xff]   ;;  %v3060_v30 = vld [vmem:[%s3789_s11 + $0x8] sm:$0xff]   ;;  %v3061_v21 = vld [vmem:[%s3789_s11 + $0x10] sm:$0xff]  }
 0x1fc   : > { %v3062_v32 = vld [vmem:[%s3789_s11 + $0x18] sm:$0xff]   ;;  %v3064_v34 = vld [vmem:[%s3789_s11 + $0x28] sm:$0xff]  }
 0x1ff   : > { %1599 = vrot.lane.b32.xlu1 %v1549_v23, %s3110_s26  ;;  %v3063_v23 = vld [vmem:[%s3789_s11 + $0x20] sm:$0xff]  }
 0x203   : > { %1617 = vrot.lane.b32.xlu1 %v1558_v35, %s3110_s26  ;;  %v3065_v35 = vld [vmem:[%s3789_s11 + $0x30] sm:$0xff]  }
 0x245   : > { %v1572_v36 = vpop.permute.xlu0 %1571 }
 0x246   : > { %v1624_v19 = vsel %vm822_vm8, %v1510_v39, %v1572_v36  ;;  %v3066_v36 = vld [vmem:[%s3789_s11 + $0x38] sm:$0xff]   ;;  %s2538_s11 = sshll.u32 %s4123_s21, 1 }
 0x247   : > { %s381_s14 = sadd.s32 %s2539_s13, %s2538_s11 }
 0x248   : > { %s2540_s21 = sshll.u32 %s381_s14, 2 }
 0x249   : > { %s3971_s12 = scalar_lea.vmem %s4085_s10, %s2540_s21 }
 0x24c   : > { %v1602_v37 = vpop.permute.xlu0 %1601 }
 0x24d   : > { %v3796_v6 = vsel %vm1649_vm2, %v1624_v19, %v1602_v37 }
 0x24e   : > { %2837 = vmatprep.mubr.msk.bf16.mxu1 %vm1686_vm3, %v3796_v6  ;;  %v1574_v15 = vpop.permute.xlu1 %1573 }
 0x24f   : > { %v1627_v41 = vsel %vm822_vm8, %v1511_v18, %v1574_v15 }
 0x250   : > { %v1576_v33 = vpop.permute.xlu0 %1575 }
 0x251   : > { %v1630_v22 = vsel %vm822_vm8, %v1512_v59, %v1576_v33 }
 0x254   : > { %v1606_v40 = vpop.permute.xlu0 %1605 }
 0x255   : > { %v1604_v42 = vpop.permute.xlu1 %1603  ;;  %v3815_v46 = vsel %vm1649_vm2, %v1630_v22, %v1606_v40 }
 0x256   : > { %v3812_v44 = vsel %vm1649_vm2, %v1627_v41, %v1604_v42 }
 0x257   : > { %2838 = vmatmul.mubr.msk.bf16.vlgmr.msra.gmra.mrb[0].mxu1 %vm1686_vm3, %v3812_v44 }
 0x258   : > { %2854 = vmatpush3.bf16.msra.mxu1 %v3575_v55  ;;  %2841 = vmatprep.mubr.msk.bf16.mxu1 %vm1686_vm3, %v3815_v46  ;;  %v1580_v43 = vpop.permute.xlu0 %1579  ;;  %v1514_v55 = vsel %vm3361_vm7, 0, %v3748_v1 }
 0x259   : > { %v1578_v29 = vpop.permute.xlu1 %1577  ;;  %2987 = vmatprep.subr.msk.bf16.mxu1 %vm1703_vm6, %v3056_v25  ;;  %v1636_v54 = vsel %vm822_vm8, %v1514_v55, %v1580_v43 }
 0x25a   : > { %v1633_v26 = vsel %vm822_vm8, %v1513_v52, %v1578_v29  ;;  %v3933_v29 = vld [vmem:[%s4080_s5] ss:$0 sm:$0xff] }
 0x25b   : > { %v3945_v52 = vld [vmem:[%s4081_s6] ss:$0 sm:$0xff] }
 0x25c   : > { %v1610_v10 = vpop.permute.xlu0 %1609  ;;  %2856 = vmatpush3.bf16.msra.mxu1 %v1816_v50  ;;  %v3938_v50 = vld [vmem:[%s4083_s8] ss:$0 sm:$0xff] }
 0x25d   : > { %v1608_v38 = vpop.permute.xlu1 %1607  ;;  %2873 = vmatprep.subr.bf16.mxu1 %v3057_v45  ;;  %v1661_v57 = vsel %vm1649_vm2, %v1636_v54, %v1610_v10 }
 0x25e   : > { %v1659_v56 = vsel %vm1649_vm2, %v1633_v26, %v1608_v38  ;;  %v3951_v26 = vld [vmem:[%s4084_s9] ss:$0 sm:$0xff] }
 0x25f   : > { %2842 = vmatmul.mubr.msk.bf16.gmra.mrb[4].mxu1 %vm1686_vm3, %v1659_v56 }
 0x260   : > { %2845 = vmatprep.mubr.msk.bf16.mxu1 %vm1686_vm3, %v1661_v57  ;;  %v1584_v58 = vpop.permute.xlu0 %1583 }
 0x261   : > { %v1582_v48 = vpop.permute.xlu1 %1581  ;;  %v1642_v1 = vsel %vm822_vm8, %v1516_v61, %v1584_v58 }
 0x262   : > { %v1639_v63 = vsel %vm822_vm8, %v1515_v31, %v1582_v48 }
 0x264   : > { %v1614_v60 = vpop.permute.xlu0 %1613 }
 0x265   : > { %v1612_v0 = vpop.permute.xlu1 %1611  ;;  %v1665_v4 = vsel %vm1649_vm2, %v1642_v1, %v1614_v60 }
 0x266   : > { %v1663_v2 = vsel %vm1649_vm2, %v1639_v63, %v1612_v0 }
 0x267   : > { %2846 = vmatmul.mubr.msk.bf16.gmra.mrb[8].mxu1 %vm1686_vm3, %v1663_v2 }
 0x268   : > { %2849 = vmatprep.mubr.msk.bf16.mxu1 %vm1686_vm3, %v1665_v4  ;;  %v1570_v5 = vpop.permute.xlu0 %1569 }
 0x269   : > { %v1586_v47 = vpop.permute.xlu1 %1585  ;;  %v1621_v3 = vsel %vm822_vm8, %v1509_v62, %v1570_v5 }
 0x26a   : > { %v1645_v7 = vsel %vm822_vm8, %v1517_v8, %v1586_v47 }
 0x26c   : > { %v1588_v12 = vpop.permute.xlu0 %1587 }
 0x26d   : > { %v1616_v11 = vpop.permute.xlu1 %1615  ;;  %v1648_v14 = vsel %vm822_vm8, %v1518_v16, %v1588_v12 }
 0x26e   : > { %v1667_v51 = vsel %vm1649_vm2, %v1645_v7, %v1616_v11 }
 0x26f   : > { %2850 = vmatmul.mubr.msk.bf16.gmra.mrb[12].mxu1 %vm1686_vm3, %v1667_v51 }
 0x271   : > { %v1600_v9 = vpop.permute.xlu1 %1599 }
 0x272   : > { %v1651_v13 = vsel %vm1649_vm2, %v1621_v3, %v1600_v9 }
 0x273   : > { %2857 = vmatprep.mubr.msk.bf16.mxu1 %vm1686_vm3, %v1651_v13 }
 0x275   : > { %v1618_v20 = vpop.permute.xlu1 %1617 }
 0x276   : > { %v1669_v49 = vsel %vm1649_vm2, %v1648_v14, %v1618_v20 }
 0x277   : > { %2858 = vmatmul.mubr.msk.bf16.vlgmr.msra.gmra.mrb[0].mxu1 %vm1686_vm3, %v3796_v6 }
 0x278   : > { %2874 = vmatpush3.bf16.msra.mxu1 %v3057_v45  ;;  %2861 = vmatprep.mubr.msk.bf16.mxu1 %vm1686_vm3, %v3812_v44 }
 0x279   : > { %2988 = vmatprep.subr.msk.bf16.mxu1 %vm1703_vm6, %v3058_v24 }
 0x27c   : > { %2876 = vmatpush3.bf16.msra.mxu1 %v1931_v53 }
 0x27d   : > { %2989 = vmatprep.subr.msk.bf16.mxu1 %vm2176_vm4, %v2111_v27 }
 0x27f   : > { %2862 = vmatmul.mubr.msk.bf16.gmra.mrb[4].mxu1 %vm1686_vm3, %v3815_v46 }
 0x280   : > { %2865 = vmatprep.mubr.msk.bf16.mxu1 %vm1686_vm3, %v1659_v56 }
 0x287   : > { %2866 = vmatmul.mubr.msk.bf16.gmra.mrb[8].mxu1 %vm1686_vm3, %v1661_v57 }
 0x288   : > { %2869 = vmatprep.mubr.msk.bf16.mxu1 %vm1686_vm3, %v1663_v2 }
 0x28f   : > { %2870 = vmatmul.mubr.msk.bf16.gmra.mrb[12].mxu1 %vm1686_vm3, %v1665_v4 }
 0x290   : > { %2877 = vmatprep.mubr.msk.bf16.mxu1 %vm1686_vm3, %v3812_v44 }
 0x297   : > { %2878 = vmatmul.mubr.msk.bf16.vlgmr.msra.gmra.mrb[0].mxu1 %vm1686_vm3, %v3815_v46 }
 0x298   : > { %2894 = vmatpush3.bf16.msra.mxu1 %v2178_v28  ;;  %2881 = vmatprep.mubr.msk.bf16.mxu1 %vm1686_vm3, %v1659_v56 }
 0x29f   : > { %2882 = vmatmul.mubr.msk.bf16.gmra.mrb[4].mxu1 %vm1686_vm3, %v1661_v57 }
 0x2a0   : > { %2885 = vmatprep.mubr.msk.bf16.mxu1 %vm1686_vm3, %v1663_v2 }
 0x2a7   : > { %2886 = vmatmul.mubr.msk.bf16.gmra.mrb[8].mxu1 %vm1686_vm3, %v1665_v4 }
 0x2a8   : > { %2889 = vmatprep.mubr.msk.bf16.mxu1 %vm1686_vm3, %v1667_v51 }
 0x2af   : > { %2890 = vmatmul.mubr.msk.bf16.gmra.mrb[12].mxu1 %vm1686_vm3, %v1669_v49 }
 0x2b0   : > { %2895 = vmatprep.mubr.msk.bf16.mxu1 %vm387_vm0, %v3059_v17 }
 0x2b7   : > { %2896 = vmatmul.mubr.msk.bf16.vlgmr.msra.gmra.mrb[16].mxu1 %vm387_vm0, %v3060_v30 }
 0x2b8   : > { %2899 = vmatprep.mubr.msk.bf16.mxu1 %vm387_vm0, %v3061_v21 }
 0x2bf   : > { %2900 = vmatmul.mubr.msk.bf16.gmra.mrb[20].mxu1 %vm387_vm0, %v3062_v32 }
 0x2c0   : > { %2903 = vmatprep.mubr.msk.bf16.mxu1 %vm387_vm0, %v3063_v23 }
 0x2c7   : > { %2904 = vmatmul.mubr.msk.bf16.gmra.mrb[24].mxu1 %vm387_vm0, %v3064_v34 }
 0x2c8   : > { %2907 = vmatprep.mubr.msk.bf16.mxu1 %vm387_vm0, %v3065_v35 }
 0x2cf   : > { %2908 = vmatmul.mubr.msk.bf16.gmra.mrb[28].mxu1 %vm387_vm0, %v3066_v36  ;;  %vm2419_vm0 = vcmask 60416  }
 0x36a   : > { %v2879_v39 = vpop.f32.mrb[0].mxu1 }
 0x36b   : > { %v1967_v19 = vpop.f32.mrb[1].mxu1  ;;  %v2055_v45 = vmul.f32 %v2879_v39, %v3933_v29 }
 0x36c   : > { %v2880_v37 = vpop.f32.mrb[2].mxu1  ;;  %v2053_v10 = vmul.f32 %v3933_v29, %v1967_v19 }
 0x36d   : > { %v1970_v6 = vpop.f32.mrb[3].mxu1  ;;  %v2056_v38 = vmul.f32 %v2880_v37, %v3933_v29  ;;  %v2078_v31 = vadd.f32 %v3945_v52, %v2055_v45 }
 0x36e   : > { %v2054_v57 = vmul.f32 %v3933_v29, %v1970_v6  ;;  %v2076_v0 = vadd.f32 %v3945_v52, %v2053_v10 }
 0x36f   : > { %v2079_v4 = vadd.f32 %v3945_v52, %v2056_v38 }
 0x370   : > { %v2077_v8 = vadd.f32 %v3945_v52, %v2054_v57 }
 0x372   : > { %v2883_v33 = vpop.f32.mrb[4].mxu1 }
 0x373   : > { %v1983_v15 = vpop.f32.mrb[5].mxu1  ;;  %v2059_v51 = vmul.f32 %v2883_v33, %v3933_v29 }
 0x374   : > { %v2884_v18 = vpop.f32.mrb[6].mxu1  ;;  %v2057_v9 = vmul.f32 %v3933_v29, %v1983_v15 }
 0x375   : > { %v1986_v40 = vpop.f32.mrb[7].mxu1  ;;  %v2060_v14 = vmul.f32 %v2884_v18, %v3933_v29  ;;  %v2082_v32 = vadd.f32 %v3945_v52, %v2059_v51 }
 0x376   : > { %v2058_v27 = vmul.f32 %v3933_v29, %v1986_v40  ;;  %v2080_v39 = vadd.f32 %v3945_v52, %v2057_v9 }
 0x377   : > { %v2083_v33 = vadd.f32 %v3945_v52, %v2060_v14 }
 0x378   : > { %v2081_v40 = vadd.f32 %v3945_v52, %v2058_v27 }
 0x37a   : > { %v3912_v41 = vpop.f32.mrb[8].mxu1 }
 0x37b   : > { %v3914_v59 = vpop.f32.mrb[9].mxu1 }
 0x37c   : > { %v3916_v42 = vpop.f32.mrb[10].mxu1 }
 0x37d   : > { %v3918_v25 = vpop.f32.mrb[11].mxu1 }
 0x382   : > { %v3921_v22 = vpop.f32.mrb[12].mxu1 }
 0x383   : > { %v3923_v44 = vpop.f32.mrb[13].mxu1 }
 0x384   : > { %v3925_v46 = vpop.f32.mrb[14].mxu1 }
 0x385   : > { %v3928_v43 = vpop.f32.mrb[15].mxu1 }
 0x38a   : > { %v2897_v55 = vpop.f32.mrb[16].mxu1 }
 0x38b   : > { %v2286_v54 = vmul.f32 %v2897_v55, %v3938_v50  ;;  %v2214_v56 = vpop.f32.mrb[17].mxu1  ;;  %v2063_v55 = vmul.f32 %v3912_v41, %v3933_v29  ;;  %v2062_v41 = vmul.f32 %v3933_v29, %v3918_v25 }
 0x38c   : > { %v2284_v58 = vmul.f32 %v3938_v50, %v2214_v56  ;;  %v2898_v48 = vpop.f32.mrb[18].mxu1  ;;  %v2061_v56 = vmul.f32 %v3933_v29, %v3914_v59 }
 0x38d   : > { %v2309_v60 = vadd.f32 %v3951_v26, %v2286_v54  ;;  %v2287_v61 = vmul.f32 %v2898_v48, %v3938_v50  ;;  %v2217_v63 = vpop.f32.mrb[19].mxu1 }
 0x38e   : > { %v2307_v1 = vadd.f32 %v3951_v26, %v2284_v58  ;;  %v2285_v2 = vmul.f32 %v3938_v50, %v2217_v63 }
 0x38f   : > { %v2325_v47 = vadd.f32 %v2309_v60, %v2078_v31  ;;  %v2310_v5 = vadd.f32 %v3951_v26, %v2287_v61  ;;  %v2064_v31 = vmul.f32 %v3916_v42, %v3933_v29 }
 0x390   : > { %v2323_v7 = vadd.f32 %v2307_v1, %v2076_v0  ;;  %v2308_v11 = vadd.f32 %v3951_v26, %v2285_v2 }
 0x391   : > { %v2341_v62 = vmax.f32 %v2325_v47, 0.0  ;;  %v2326_v3 = vadd.f32 %v2310_v5, %v2079_v4  ;;  %v2086_v47 = vadd.f32 %v3945_v52, %v2063_v55 }
 0x392   : > { %v2339_v12 = vmax.f32 %v2323_v7, 0.0  ;;  %v2324_v13 = vadd.f32 %v2308_v11, %v2077_v8  ;;  %v2901_v16 = vpop.f32.mrb[20].mxu1  ;;  %v2084_v11 = vadd.f32 %v3945_v52, %v2061_v56 }
 0x393   : > { %v2681_v20 = vpack.c.bf16 %v2341_v62, %v2341_v62  ;;  %v2342_v24 = vmax.f32 %v2326_v3, 0.0  ;;  %v2290_v49 = vmul.f32 %v2901_v16, %v3938_v50  ;;  %v2230_v53 = vpop.f32.mrb[21].mxu1  ;;  %v2087_v3 = vadd.f32 %v3945_v52, %v2064_v31 }
 0x394   : > { %v2679_v28 = vpack.c.bf16 %v2339_v12, %v2339_v12  ;;  %v2340_v17 = vmax.f32 %v2324_v13, 0.0  ;;  %v2288_v30 = vmul.f32 %v3938_v50, %v2230_v53  ;;  %v2902_v21 = vpop.f32.mrb[22].mxu1  ;;  %v2085_v13 = vadd.f32 %v3945_v52, %v2062_v41 }
 0x395   : > { %2422 = vst.msk [vmem:[%s3971_s12 + $0x8] sm:$0xf] %vm2419_vm0, %v2681_v20  ;;  %v2682_v23 = vpack.c.bf16 %v2342_v24, %v2342_v24  ;;  %v2313_v34 = vadd.f32 %v3951_v26, %v2290_v49  ;;  %v2291_v35 = vmul.f32 %v2902_v21, %v3938_v50  ;;  %v2233_v36 = vpop.f32.mrb[23].mxu1  ;;  %v2067_v20 = vmul.f32 %v3921_v22, %v3933_v29 }
 0x396   : > { %2420 = vst.msk [vmem:[%s3971_s12] sm:$0xf] %vm2419_vm0, %v2679_v28  ;;  %v2680_v19 = vpack.c.bf16 %v2340_v17, %v2340_v17  ;;  %v2311_v37 = vadd.f32 %v3951_v26, %v2288_v30  ;;  %v2289_v6 = vmul.f32 %v3938_v50, %v2233_v36  ;;  %v2065_v53 = vmul.f32 %v3933_v29, %v3923_v44 }
 0x397   : > { %2423 = vst.msk [vmem:[%s3971_s12 + $0xc] sm:$0xf] %vm2419_vm0, %v2682_v23  ;;  %v2329_v15 = vadd.f32 %v2313_v34, %v2082_v32  ;;  %v2314_v18 = vadd.f32 %v3951_v26, %v2291_v35  ;;  %v2068_v30 = vmul.f32 %v3925_v46, %v3933_v29  ;;  %v2066_v22 = vmul.f32 %v3933_v29, %v3928_v43 }
 0x398   : > { %2421 = vst.msk [vmem:[%s3971_s12 + $0x4] sm:$0xf] %vm2419_vm0, %v2680_v19  ;;  %v2327_v45 = vadd.f32 %v2311_v37, %v2080_v39  ;;  %v2312_v10 = vadd.f32 %v3951_v26, %v2289_v6  ;;  %v2090_v19 = vadd.f32 %v3945_v52, %v2067_v20 }
 0x399   : > { %v2345_v38 = vmax.f32 %v2329_v15, 0.0  ;;  %v2330_v54 = vadd.f32 %v2314_v18, %v2083_v33  ;;  %v2088_v15 = vadd.f32 %v3945_v52, %v2065_v53  ;;  %v2089_v55 = vadd.f32 %v3945_v52, %v2066_v22 }
 0x39a   : > { %v2343_v57 = vmax.f32 %v2327_v45, 0.0  ;;  %v2328_v58 = vadd.f32 %v2312_v10, %v2081_v40  ;;  %v2905_v48 = vpop.f32.mrb[24].mxu1  ;;  %v2091_v40 = vadd.f32 %v3945_v52, %v2068_v30 }
 0x39b   : > { %v2685_v60 = vpack.c.bf16 %v2345_v38, %v2345_v38  ;;  %v2346_v61 = vmax.f32 %v2330_v54, 0.0  ;;  %v2294_v63 = vmul.f32 %v2905_v48, %v3938_v50  ;;  %v2246_v0 = vpop.f32.mrb[25].mxu1 }
 0x39c   : > { %v2683_v1 = vpack.c.bf16 %v2343_v57, %v2343_v57  ;;  %v2344_v2 = vmax.f32 %v2328_v58, 0.0  ;;  %v2292_v59 = vmul.f32 %v3938_v50, %v2246_v0  ;;  %v2906_v4 = vpop.f32.mrb[26].mxu1 }
 0x39d   : > { %2426 = vst.msk [vmem:[%s3971_s12 + $0x18] sm:$0xf] %vm2419_vm0, %v2685_v60  ;;  %v2686_v42 = vpack.c.bf16 %v2346_v61, %v2346_v61  ;;  %v2317_v5 = vadd.f32 %v3951_v26, %v2294_v63  ;;  %v2295_v8 = vmul.f32 %v2906_v4, %v3938_v50  ;;  %v2249_v7 = vpop.f32.mrb[27].mxu1 }
 0x39e   : > { %2424 = vst.msk [vmem:[%s3971_s12 + $0x10] sm:$0xf] %vm2419_vm0, %v2683_v1  ;;  %v2684_v25 = vpack.c.bf16 %v2344_v2, %v2344_v2  ;;  %v2315_v51 = vadd.f32 %v3951_v26, %v2292_v59  ;;  %v2293_v62 = vmul.f32 %v3938_v50, %v2249_v7 }
 0x39f   : > { %2427 = vst.msk [vmem:[%s3971_s12 + $0x1c] sm:$0xf] %vm2419_vm0, %v2686_v42  ;;  %v2333_v9 = vadd.f32 %v2317_v5, %v2086_v47  ;;  %v2318_v12 = vadd.f32 %v3951_v26, %v2295_v8 }
 0x3a0   : > { %2425 = vst.msk [vmem:[%s3971_s12 + $0x14] sm:$0xf] %vm2419_vm0, %v2684_v25  ;;  %v2331_v16 = vadd.f32 %v2315_v51, %v2084_v11  ;;  %v2316_v14 = vadd.f32 %v3951_v26, %v2293_v62 }
 0x3a1   : > { %v2349_v24 = vmax.f32 %v2333_v9, 0.0  ;;  %v2334_v49 = vadd.f32 %v2318_v12, %v2087_v3 }
 0x3a2   : > { %v2347_v27 = vmax.f32 %v2331_v16, 0.0  ;;  %v2332_v28 = vadd.f32 %v2316_v14, %v2085_v13  ;;  %v2909_v17 = vpop.f32.mrb[28].mxu1 }
 0x3a3   : > { %v2689_v21 = vpack.c.bf16 %v2349_v24, %v2349_v24  ;;  %v2350_v32 = vmax.f32 %v2334_v49, 0.0  ;;  %v2298_v23 = vmul.f32 %v2909_v17, %v3938_v50  ;;  %v2262_v34 = vpop.f32.mrb[29].mxu1 }
 0x3a4   : > { %v2687_v35 = vpack.c.bf16 %v2347_v27, %v2347_v27  ;;  %v2348_v36 = vmax.f32 %v2332_v28, 0.0  ;;  %v2296_v44 = vmul.f32 %v3938_v50, %v2262_v34  ;;  %v2910_v39 = vpop.f32.mrb[30].mxu1 }
 0x3a5   : > { %2430 = vst.msk [vmem:[%s3971_s12 + $0x28] sm:$0xf] %vm2419_vm0, %v2689_v21  ;;  %v2690_v46 = vpack.c.bf16 %v2350_v32, %v2350_v32  ;;  %v2321_v37 = vadd.f32 %v3951_v26, %v2298_v23  ;;  %v2299_v6 = vmul.f32 %v2910_v39, %v3938_v50  ;;  %v2265_v33 = vpop.f32.mrb[31].mxu1 }
 0x3a6   : > { %2428 = vst.msk [vmem:[%s3971_s12 + $0x20] sm:$0xf] %vm2419_vm0, %v2687_v35  ;;  %v2688_v43 = vpack.c.bf16 %v2348_v36, %v2348_v36  ;;  %v2319_v29 = vadd.f32 %v3951_v26, %v2296_v44  ;;  %v2297_v18 = vmul.f32 %v3938_v50, %v2265_v33 }
 0x3a7   : > { %2431 = vst.msk [vmem:[%s3971_s12 + $0x2c] sm:$0xf] %vm2419_vm0, %v2690_v46  ;;  %v2337_v45 = vadd.f32 %v2321_v37, %v2090_v19  ;;  %v2322_v10 = vadd.f32 %v3951_v26, %v2299_v6 }
 0x3a8   : > { %2429 = vst.msk [vmem:[%s3971_s12 + $0x24] sm:$0xf] %vm2419_vm0, %v2688_v43  ;;  %v2335_v38 = vadd.f32 %v2319_v29, %v2088_v15  ;;  %v2320_v54 = vadd.f32 %v3951_v26, %v2297_v18 }
 0x3a9   : > { %v2353_v56 = vmax.f32 %v2337_v45, 0.0  ;;  %v2338_v50 = vadd.f32 %v2322_v10, %v2091_v40 }
 0x3aa   : > { %v2351_v57 = vmax.f32 %v2335_v38, 0.0  ;;  %v2336_v58 = vadd.f32 %v2320_v54, %v2089_v55 }
 0x3ab   : > { %v2693_v48 = vpack.c.bf16 %v2353_v56, %v2353_v56  ;;  %v2354_v31 = vmax.f32 %v2338_v50, 0.0 }
 0x3ac   : > { %v2691_v60 = vpack.c.bf16 %v2351_v57, %v2351_v57  ;;  %v2352_v61 = vmax.f32 %v2336_v58, 0.0 }
 0x3ad   : > { %2434 = vst.msk [vmem:[%s3971_s12 + $0x38] sm:$0xf] %vm2419_vm0, %v2693_v48  ;;  %v2694_v63 = vpack.c.bf16 %v2354_v31, %v2354_v31 }
 0x3ae   : > { %2432 = vst.msk [vmem:[%s3971_s12 + $0x30] sm:$0xf] %vm2419_vm0, %v2691_v60  ;;  %v2692_v52 = vpack.c.bf16 %v2352_v61, %v2352_v61 }
 0x3af   : > { %2435 = vst.msk [vmem:[%s3971_s12 + $0x3c] sm:$0xf] %vm2419_vm0, %v2694_v63 }
 0x3b0   : > { %2433 = vst.msk [vmem:[%s3971_s12 + $0x34] sm:$0xf] %vm2419_vm0, %v2692_v52 }
 0x3b1 PF: > { %s20_s17 = sadd.s32 1, %s3105_s17   ;;  %s4110_s13 = smov %s3097_s15 }
 0x3b2   : > { %p17_p7 = scmp.ge.s32.totalorder %s20_s17, 6   ;;  %s4111_s14 = smov %s3101_s16 }
 0x3b3   : > { %s4112_s15 = smov %s4115_s18  ;;  %s4113_s16 = smov %s4119_s19 }
 0x3b4   :  { %19 = sbr.rel (!%p17_p7) target bundleno = 3 (0x3), region = 98 }

</bundles_post_ra>
